<compile_context>
chip_gen: v7x
topology: tpu7x:2x2x1
jax: 0.10.0
libtpu: 0.0.40
codegen_flags: <defaults>
</compile_context>

<pallas_src>
import math
import numpy as np

import jax
import jax.numpy as jnp
from jax.experimental import pallas as pl

# ----------------------------- model hyper-params -----------------------------
BATCH      = 2
SEQ_LEN    = 8          # T
INP_DIM    = 16         # acoustic feature dim
HIDDEN     = 32         # transformer hidden size
NUM_HEADS  = 4
HEAD_DIM   = HIDDEN // NUM_HEADS
INTER      = 64         # feed-forward intermediate size
NUM_LAYERS = 2
LN_EPS     = 1e-12      # BERT/Mockingjay LayerNorm eps

N_ROWS     = SEQ_LEN * BATCH          # flattened rows (time-major): r = t*B + b
LANES      = 128

# const slab layout (rows x 128 lanes)
CONST_ROWS   = 24
# rows 0:16  lanes   0:32  -> W_in (INP_DIM x HIDDEN)
# rows 0:16  lanes  32:48  -> structural attention bias (N x N): 0 same-batch, -1e9 else
# rows 0:16  lanes  48:80  -> sinusoid positional encoding per flattened row
# row  16    lanes   0:32 / 32:64 / 64:96 -> frontend bias / LN gamma / LN beta
# row  17    lanes   0:16  -> key time index t = col // B (float)

# per-layer slab layout (104 rows x 128 lanes)
LAYER_ROWS   = 104
ROW_B_QKV    = 96   # lanes 0:96  = [bq' | bk | bv]
ROW_MISC1    = 97   # lanes 0:32 = bo, 32:64 = ln1_g, 64:96 = ln1_b
ROW_MISC2    = 98   # lanes 0:64 = b_i, 64:96 = bf
ROW_MISC3    = 99   # lanes 0:32 = ln2_g, 32:64 = ln2_b
# rows  0:32  lanes 0:128 = [Wq' | Wk | Wv | Wo]
# rows 32:64  lanes 0:64  = Wi (HIDDEN x INTER)
# rows 32:96  lanes 64:96 = Wf (INTER x HIDDEN)


# ----------------------------- in-kernel helpers -------------------------------
_GELU_C = math.sqrt(2.0 / math.pi)


def _gelu(x):
    # TODO(synk): exact erf-based GELU (as in Mockingjay) replaced by the tanh
    # approximation (~3e-4 max abs error) so transcendentals stay on the EUP.
    return 0.5 * x * (1.0 + jnp.tanh(_GELU_C * (x + 0.044715 * x * x * x)))


def _layer_norm(x, gamma, beta):
    # BERT-style LayerNorm over the last axis, eps=1e-12, biased variance.
    mu = jnp.mean(x, axis=-1, keepdims=True)
    var = jnp.mean(jnp.square(x - mu), axis=-1, keepdims=True)
    return (x - mu) * jax.lax.rsqrt(var + LN_EPS) * gamma + beta


# ----------------------------- fused Pallas kernel -----------------------------
def transformer_kernel(xp_ref, const_ref, layers_ref, o_ref):
    """Frontend + NUM_LAYERS post-norm encoder layers, fully VMEM resident."""
    N = N_ROWS
    xp = xp_ref[...]                          # (16, 128): [x | zeros]
    c = const_ref[...]                        # (24, 128)

    x = xp[:, 0:INP_DIM]                      # (N, D_in)
    w_in = c[0:INP_DIM, 0:HIDDEN]             # (D_in, H)
    struct_bias = c[0:N, HIDDEN:HIDDEN + N]   # (N, N): 0 same-batch, -1e9 cross-batch
    pos = c[0:N, 48:48 + HIDDEN]              # (N, H)
    fe_b = c[N:N + 1, 0:HIDDEN]
    fe_g = c[N:N + 1, HIDDEN:2 * HIDDEN]
    fe_bt = c[N:N + 1, 2 * HIDDEN:3 * HIDDEN]
    t_col = c[N + 1:N + 2, 0:N]               # (1, N) key time index

    # --- data-dependent padding bias (spec_len = #frames with nonzero sum) ------
    nz = (jnp.sum(x, axis=-1, keepdims=True) != 0.0).astype(jnp.float32)      # (N, 1)
    same_batch = struct_bias == 0.0
    speclen = jnp.sum(jnp.where(same_batch, nz, 0.0), axis=0, keepdims=True)  # (1, N)
    pad_bias = jnp.where(t_col >= speclen, -10000.0, 0.0)                     # (1, N)
    bias = struct_bias + pad_bias                                             # (N, N)

    # --- frontend: Linear(D_in -> H) + sinusoid pos enc + LayerNorm -------------
    h = jnp.dot(x, w_in, preferred_element_type=jnp.float32) + fe_b + pos
    h = _layer_norm(h, fe_g, fe_bt)

    for l in range(NUM_LAYERS):               # static unroll (tiny model)
        ws = layers_ref[l]                    # (104, 128)
        w_qkvo = ws[0:HIDDEN, :]              # (32, 128) = [Wq' | Wk | Wv | Wo]
        b_qkv = ws[ROW_B_QKV:ROW_B_QKV + 1, :]                    # (1, 128)
        wo = ws[0:HIDDEN, 3 * HIDDEN:4 * HIDDEN]                  # (32, 32)
        bo = ws[ROW_MISC1:ROW_MISC1 + 1, 0:HIDDEN]
        g1 = ws[ROW_MISC1:ROW_MISC1 + 1, HIDDEN:2 * HIDDEN]
        b1 = ws[ROW_MISC1:ROW_MISC1 + 1, 2 * HIDDEN:3 * HIDDEN]
        wi = ws[HIDDEN:2 * HIDDEN, 0:INTER]                       # (32, 64)
        wf = ws[HIDDEN:HIDDEN + INTER, INTER:INTER + HIDDEN]      # (64, 32)
        b_i = ws[ROW_MISC2:ROW_MISC2 + 1, 0:INTER]
        bf = ws[ROW_MISC2:ROW_MISC2 + 1, INTER:INTER + HIDDEN]
        g2 = ws[ROW_MISC3:ROW_MISC3 + 1, 0:HIDDEN]
        b2 = ws[ROW_MISC3:ROW_MISC3 + 1, HIDDEN:2 * HIDDEN]

        # ---- fused QKV(+O) projection: one lane-dense matmul -------------------
        # lanes 96:128 hold h @ Wo + 0 which is unused (finite garbage).
        qkvo = jnp.dot(h, w_qkvo, preferred_element_type=jnp.float32) + b_qkv  # (N, 128)

        # ---- per-head attention (Wq/bq pre-scaled by 1/sqrt(dh) host-side) -----
        ctxs = []
        for hd in range(NUM_HEADS):           # static unroll
            q = qkvo[:, hd * HEAD_DIM:(hd + 1) * HEAD_DIM]
            k = qkvo[:, HIDDEN + hd * HEAD_DIM:HIDDEN + (hd + 1) * HEAD_DIM]
            v = qkvo[:, 2 * HIDDEN + hd * HEAD_DIM:2 * HIDDEN + (hd + 1) * HEAD_DIM]
            s = jax.lax.dot_general(q, k, (((1,), (1,)), ((), ())),
                                    preferred_element_type=jnp.float32)        # (N, N)
            s = s + bias
            s = s - jnp.max(s, axis=-1, keepdims=True)
            p = jnp.exp(s)
            p = p * pl.reciprocal(jnp.sum(p, axis=-1, keepdims=True), approx=True)
            ctxs.append(jnp.dot(p, v, preferred_element_type=jnp.float32))     # (N, dh)

        # ---- fused output projection over lane-concatenated heads --------------
        ctx = jnp.concatenate(ctxs, axis=1)                                    # (N, 32)
        attn = jnp.dot(ctx, wo, preferred_element_type=jnp.float32) + bo

        # ---- post-norm residual + GELU FFN --------------------------------------
        h1 = _layer_norm(attn + h, g1, b1)
        inter = _gelu(jnp.dot(h1, wi, preferred_element_type=jnp.float32) + b_i)
        ffn = jnp.dot(inter, wf, preferred_element_type=jnp.float32) + bf
        h = _layer_norm(ffn + h1, g2, b2)

    # lane-dense (unmasked) output store; wrapper slices lanes 0:HIDDEN back out.
    o_ref[...] = jnp.concatenate(
        [h, jnp.zeros((N, LANES - HIDDEN), jnp.float32)], axis=1).astype(o_ref.dtype)


# ----------------------------- host-side packing --------------------------------
def _sinusoid_table(seq_len, hidden_size):
    """Same formula as get_sinusoid_table()[:seq_len]."""
    pos = np.arange(seq_len)[:, None].astype(np.float64)
    hid = np.arange(hidden_size)[None, :]
    table = pos / np.power(10000, 2 * (hid // 2) / hidden_size)
    table[:, 0::2] = np.sin(table[:, 0::2])
    table[:, 1::2] = np.cos(table[:, 1::2])
    return table.astype(np.float32)


def init_params(key):
    """BERT-style init (std=0.02), packed into two lane-dense VMEM slabs."""
    std = 0.02
    ks = jax.random.split(key, 1 + NUM_LAYERS * 6)

    def w(k, din, dout):
        return np.asarray(std * jax.random.normal(k, (din, dout), jnp.float32))

    # ---------------- const slab ----------------
    const = np.zeros((CONST_ROWS, LANES), np.float32)
    const[0:INP_DIM, 0:HIDDEN] = w(ks[0], INP_DIM, HIDDEN)               # W_in

    rows = np.arange(N_ROWS)
    same_batch = (rows[:, None] % BATCH) == (rows[None, :] % BATCH)
    const[0:N_ROWS, HIDDEN:HIDDEN + N_ROWS] = np.where(same_batch, 0.0, -1.0e9)

    pos_flat = np.repeat(_sinusoid_table(SEQ_LEN, HIDDEN), BATCH, axis=0)  # (N, H)
    const[0:N_ROWS, 48:48 + HIDDEN] = pos_flat

    const[N_ROWS, 0:HIDDEN] = 0.0                                        # frontend bias
    const[N_ROWS, HIDDEN:2 * HIDDEN] = 1.0                               # frontend LN gamma
    const[N_ROWS, 2 * HIDDEN:3 * HIDDEN] = 0.0                           # frontend LN beta
    const[N_ROWS + 1, 0:N_ROWS] = (rows // BATCH).astype(np.float32)     # key time index

    # ---------------- per-layer slabs ----------------
    layers = np.zeros((NUM_LAYERS, LAYER_ROWS, LANES), np.float32)
    inv_sqrt_dh = 1.0 / math.sqrt(HEAD_DIM)
    ki = 1
    for l in range(NUM_LAYERS):
        wq = w(ks[ki + 0], HIDDEN, HIDDEN) * inv_sqrt_dh   # fold 1/sqrt(dh) into Wq
        wk = w(ks[ki + 1], HIDDEN, HIDDEN)
        wv = w(ks[ki + 2], HIDDEN, HIDDEN)
        wo = w(ks[ki + 3], HIDDEN, HIDDEN)
        wi = w(ks[ki + 4], HIDDEN, INTER)
        wf = w(ks[ki + 5], INTER, HIDDEN)
        ki += 6
        layers[l, 0:HIDDEN, 0:HIDDEN] = wq
        layers[l, 0:HIDDEN, HIDDEN:2 * HIDDEN] = wk
        layers[l, 0:HIDDEN, 2 * HIDDEN:3 * HIDDEN] = wv
        layers[l, 0:HIDDEN, 3 * HIDDEN:4 * HIDDEN] = wo
        layers[l, HIDDEN:2 * HIDDEN, 0:INTER] = wi
        layers[l, HIDDEN:HIDDEN + INTER, INTER:INTER + HIDDEN] = wf
        # biases are zero-init (rows 96/97/98/99 default 0); LN gammas = 1.
        layers[l, ROW_MISC1, HIDDEN:2 * HIDDEN] = 1.0     # LN1 gamma
        layers[l, ROW_MISC3, 0:HIDDEN] = 1.0              # LN2 gamma

    return {"const": jnp.asarray(const), "layers": jnp.asarray(layers)}


# ----------------------------- wrapper -------------------------------------------
def transformer_forward(x_tbd, params):
    """x_tbd: (T, B, D_in) time-major (permute_input=True). Returns (T, B, H)."""
    T, B, Din = x_tbd.shape
    N = T * B
    # Flatten time-major (row r = t*B + b); pad to a single lane-dense input slab.
    x_flat = x_tbd.reshape(N, Din).astype(jnp.float32)
    xp = jnp.concatenate([x_flat, jnp.zeros((N, LANES - Din), jnp.float32)], axis=1)

    out = pl.pallas_call(
        transformer_kernel,
        out_shape=jax.ShapeDtypeStruct((N, LANES), jnp.float32),
    )(xp, params["const"], params["layers"])

    # encoder_feat=True, weighted_sum=False, select_layer=-1 -> last encoder layer.
    # SpecHead (pred_spec / pred_state) is unused so it is not computed.
    return out[:, :HIDDEN].reshape(T, B, HIDDEN)


# ----------------------------- main ----------------------------------------------
if __name__ == "__main__":
    key = jax.random.PRNGKey(0)
    k_x, k_p = jax.random.split(key)
    params = init_params(k_p)
    # time-major input (T, B, D_in), matching permute_input=True
    x = jax.random.normal(k_x, (SEQ_LEN, BATCH, INP_DIM), dtype=jnp.float32)

    fwd = jax.jit(lambda xx: transformer_forward(xx, params))
    out = fwd(x)
    jax.block_until_ready(out)
    assert out.shape == (SEQ_LEN, BATCH, HIDDEN), out.shape
    assert bool(jnp.all(jnp.isfinite(out)))
    print("KERNEL_OK")
</pallas_src>

<mosaic_0001>
module attributes {stable_mosaic.version = 11 : i64} {
  func.func @transformer_kernel(%arg0: memref<16x128xf32, #tpu.memory_space<vmem>>, %arg1: memref<24x128xf32, #tpu.memory_space<vmem>>, %arg2: memref<2x104x128xf32, #tpu.memory_space<vmem>>, %arg3: memref<16x128xf32, #tpu.memory_space<vmem>>) attributes {dimension_semantics = [], scalar_prefetch = 0 : i64, scratch_operands = 0 : i64, tpu.core_type = #tpu.core_type<tc>} {
    %c0 = arith.constant 0 : index
    %c0_0 = arith.constant 0 : index
    %0 = vector.load %arg0[%c0, %c0_0] : memref<16x128xf32, #tpu.memory_space<vmem>>, vector<16x128xf32>
    %c0_1 = arith.constant 0 : index
    %c0_2 = arith.constant 0 : index
    %1 = vector.load %arg1[%c0_1, %c0_2] : memref<24x128xf32, #tpu.memory_space<vmem>>, vector<24x128xf32>
    %2 = vector.extract_strided_slice %0 {offsets = [0, 0], sizes = [16, 16], strides = [1, 1]} : vector<16x128xf32> to vector<16x16xf32>
    %3 = vector.extract_strided_slice %1 {offsets = [0, 0], sizes = [16, 32], strides = [1, 1]} : vector<24x128xf32> to vector<16x32xf32>
    %4 = vector.extract_strided_slice %1 {offsets = [0, 32], sizes = [16, 16], strides = [1, 1]} : vector<24x128xf32> to vector<16x16xf32>
    %5 = vector.extract_strided_slice %1 {offsets = [0, 48], sizes = [16, 32], strides = [1, 1]} : vector<24x128xf32> to vector<16x32xf32>
    %6 = vector.extract_strided_slice %1 {offsets = [16, 0], sizes = [1, 32], strides = [1, 1]} : vector<24x128xf32> to vector<1x32xf32>
    %7 = vector.extract_strided_slice %1 {offsets = [16, 32], sizes = [1, 32], strides = [1, 1]} : vector<24x128xf32> to vector<1x32xf32>
    %8 = vector.extract_strided_slice %1 {offsets = [16, 64], sizes = [1, 32], strides = [1, 1]} : vector<24x128xf32> to vector<1x32xf32>
    %9 = vector.extract_strided_slice %1 {offsets = [17, 0], sizes = [1, 16], strides = [1, 1]} : vector<24x128xf32> to vector<1x16xf32>
    %cst = arith.constant dense<0.000000e+00> : vector<16xf32>
    %10 = vector.multi_reduction <add>, %2, %cst [1] : vector<16x16xf32> to vector<16xf32>
    %11 = vector.shape_cast %10 : vector<16xf32> to vector<16x1xf32>
    %cst_3 = arith.constant 0.000000e+00 : f32
    %12 = vector.broadcast %cst_3 : f32 to vector<16x1xf32>
    %13 = arith.cmpf one, %11, %12 : vector<16x1xf32>
    %14 = arith.extui %13 : vector<16x1xi1> to vector<16x1xi32>
    %15 = arith.sitofp %14 : vector<16x1xi32> to vector<16x1xf32>
    %cst_4 = arith.constant 0.000000e+00 : f32
    %16 = vector.broadcast %cst_4 : f32 to vector<16x16xf32>
    %17 = arith.cmpf oeq, %4, %16 : vector<16x16xf32>
    %cst_5 = arith.constant 0.000000e+00 : f32
    %18 = vector.shape_cast %15 : vector<16x1xf32> to vector<16x1xf32>
    %19 = vector.broadcast %18 : vector<16x1xf32> to vector<16x16xf32>
    %20 = vector.broadcast %cst_5 : f32 to vector<16x16xf32>
    %21 = arith.select %17, %19, %20 : vector<16x16xi1>, vector<16x16xf32>
    %cst_6 = arith.constant dense<0.000000e+00> : vector<16xf32>
    %22 = vector.multi_reduction <add>, %21, %cst_6 [0] : vector<16x16xf32> to vector<16xf32>
    %23 = vector.shape_cast %22 : vector<16xf32> to vector<1x16xf32>
    %24 = arith.cmpf oge, %9, %23 : vector<1x16xf32>
    %cst_7 = arith.constant -1.000000e+04 : f32
    %cst_8 = arith.constant 0.000000e+00 : f32
    %25 = vector.broadcast %cst_7 : f32 to vector<1x16xf32>
    %26 = vector.broadcast %cst_8 : f32 to vector<1x16xf32>
    %27 = arith.select %24, %25, %26 : vector<1x16xi1>, vector<1x16xf32>
    %28 = vector.broadcast %27 : vector<1x16xf32> to vector<16x16xf32>
    %29 = arith.addf %4, %28 : vector<16x16xf32>
    %cst_9 = arith.constant dense<0.000000e+00> : vector<16x32xf32>
    %30 = tpu.matmul %2, %3, %cst_9 {dimension_numbers = #tpu.dot_dimension_numbers<[1], [0], [0], [1], [0, 0, 1, 1], [], []>} : vector<16x16xf32>, vector<16x32xf32>, vector<16x32xf32> -> vector<16x32xf32>
    %31 = vector.broadcast %6 : vector<1x32xf32> to vector<16x32xf32>
    %32 = arith.addf %30, %31 : vector<16x32xf32>
    %33 = arith.addf %32, %5 : vector<16x32xf32>
    %cst_10 = arith.constant dense<0.000000e+00> : vector<16xf32>
    %34 = vector.multi_reduction <add>, %33, %cst_10 [1] : vector<16x32xf32> to vector<16xf32>
    %35 = vector.shape_cast %34 : vector<16xf32> to vector<16x1xf32>
    %cst_11 = arith.constant 3.200000e+01 : f32
    %36 = vector.broadcast %cst_11 : f32 to vector<16x1xf32>
    %37 = arith.divf %35, %36 : vector<16x1xf32>
    %38 = vector.broadcast %37 : vector<16x1xf32> to vector<16x32xf32>
    %39 = arith.subf %33, %38 : vector<16x32xf32>
    %40 = arith.mulf %39, %39 : vector<16x32xf32>
    %cst_12 = arith.constant dense<0.000000e+00> : vector<16xf32>
    %41 = vector.multi_reduction <add>, %40, %cst_12 [1] : vector<16x32xf32> to vector<16xf32>
    %42 = vector.shape_cast %41 : vector<16xf32> to vector<16x1xf32>
    %cst_13 = arith.constant 3.200000e+01 : f32
    %43 = vector.broadcast %cst_13 : f32 to vector<16x1xf32>
    %44 = arith.divf %42, %43 : vector<16x1xf32>
    %45 = vector.broadcast %37 : vector<16x1xf32> to vector<16x32xf32>
    %46 = arith.subf %33, %45 : vector<16x32xf32>
    %cst_14 = arith.constant 9.99999996E-13 : f32
    %47 = vector.broadcast %cst_14 : f32 to vector<16x1xf32>
    %48 = arith.addf %44, %47 : vector<16x1xf32>
    %49 = math.rsqrt %48 : vector<16x1xf32>
    %50 = vector.broadcast %49 : vector<16x1xf32> to vector<16x32xf32>
    %51 = arith.mulf %46, %50 : vector<16x32xf32>
    %52 = vector.broadcast %7 : vector<1x32xf32> to vector<16x32xf32>
    %53 = arith.mulf %51, %52 : vector<16x32xf32>
    %54 = vector.broadcast %8 : vector<1x32xf32> to vector<16x32xf32>
    %55 = arith.addf %53, %54 : vector<16x32xf32>
    %c0_15 = arith.constant 0 : index
    %c0_16 = arith.constant 0 : index
    %c0_17 = arith.constant 0 : index
    %56 = vector.load %arg2[%c0_15, %c0_16, %c0_17] : memref<2x104x128xf32, #tpu.memory_space<vmem>>, vector<1x104x128xf32>
    %57 = vector.shape_cast %56 : vector<1x104x128xf32> to vector<104x128xf32>
    %58 = vector.extract_strided_slice %57 {offsets = [0, 0], sizes = [32, 128], strides = [1, 1]} : vector<104x128xf32> to vector<32x128xf32>
    %59 = vector.extract_strided_slice %57 {offsets = [96, 0], sizes = [1, 128], strides = [1, 1]} : vector<104x128xf32> to vector<1x128xf32>
    %60 = vector.extract_strided_slice %57 {offsets = [0, 96], sizes = [32, 32], strides = [1, 1]} : vector<104x128xf32> to vector<32x32xf32>
    %61 = vector.extract_strided_slice %57 {offsets = [97, 0], sizes = [1, 32], strides = [1, 1]} : vector<104x128xf32> to vector<1x32xf32>
    %62 = vector.extract_strided_slice %57 {offsets = [97, 32], sizes = [1, 32], strides = [1, 1]} : vector<104x128xf32> to vector<1x32xf32>
    %63 = vector.extract_strided_slice %57 {offsets = [97, 64], sizes = [1, 32], strides = [1, 1]} : vector<104x128xf32> to vector<1x32xf32>
    %64 = vector.extract_strided_slice %57 {offsets = [32, 0], sizes = [32, 64], strides = [1, 1]} : vector<104x128xf32> to vector<32x64xf32>
    %65 = vector.extract_strided_slice %57 {offsets = [32, 64], sizes = [64, 32], strides = [1, 1]} : vector<104x128xf32> to vector<64x32xf32>
    %66 = vector.extract_strided_slice %57 {offsets = [98, 0], sizes = [1, 64], strides = [1, 1]} : vector<104x128xf32> to vector<1x64xf32>
    %67 = vector.extract_strided_slice %57 {offsets = [98, 64], sizes = [1, 32], strides = [1, 1]} : vector<104x128xf32> to vector<1x32xf32>
    %68 = vector.extract_strided_slice %57 {offsets = [99, 0], sizes = [1, 32], strides = [1, 1]} : vector<104x128xf32> to vector<1x32xf32>
    %69 = vector.extract_strided_slice %57 {offsets = [99, 32], sizes = [1, 32], strides = [1, 1]} : vector<104x128xf32> to vector<1x32xf32>
    %cst_18 = arith.constant dense<0.000000e+00> : vector<16x128xf32>
    %70 = tpu.matmul %55, %58, %cst_18 {dimension_numbers = #tpu.dot_dimension_numbers<[1], [0], [0], [1], [0, 0, 1, 1], [], []>} : vector<16x32xf32>, vector<32x128xf32>, vector<16x128xf32> -> vector<16x128xf32>
    %71 = vector.broadcast %59 : vector<1x128xf32> to vector<16x128xf32>
    %72 = arith.addf %70, %71 : vector<16x128xf32>
    %73 = vector.extract_strided_slice %72 {offsets = [0, 0], sizes = [16, 8], strides = [1, 1]} : vector<16x128xf32> to vector<16x8xf32>
    %74 = vector.extract_strided_slice %72 {offsets = [0, 32], sizes = [16, 8], strides = [1, 1]} : vector<16x128xf32> to vector<16x8xf32>
    %75 = vector.extract_strided_slice %72 {offsets = [0, 64], sizes = [16, 8], strides = [1, 1]} : vector<16x128xf32> to vector<16x8xf32>
    %cst_19 = arith.constant dense<0.000000e+00> : vector<16x16xf32>
    %76 = tpu.matmul %73, %74, %cst_19 {dimension_numbers = #tpu.dot_dimension_numbers<[1], [1], [0], [0], [0, 0, 1, 0], [], []>} : vector<16x8xf32>, vector<16x8xf32>, vector<16x16xf32> -> vector<16x16xf32>
    %77 = arith.addf %76, %29 : vector<16x16xf32>
    %cst_20 = arith.constant dense<0xFF800000> : vector<16xf32>
    %78 = vector.multi_reduction <maximumf>, %77, %cst_20 [1] : vector<16x16xf32> to vector<16xf32>
    %79 = vector.shape_cast %78 : vector<16xf32> to vector<16x1xf32>
    %80 = vector.broadcast %79 : vector<16x1xf32> to vector<16x16xf32>
    %81 = arith.subf %77, %80 : vector<16x16xf32>
    %82 = math.exp %81 : vector<16x16xf32>
    %cst_21 = arith.constant dense<0.000000e+00> : vector<16xf32>
    %83 = vector.multi_reduction <add>, %82, %cst_21 [1] : vector<16x16xf32> to vector<16xf32>
    %84 = vector.shape_cast %83 : vector<16xf32> to vector<16x1xf32>
    %85 = tpu.reciprocal %84 {approx = true} : vector<16x1xf32> -> vector<16x1xf32>
    %86 = vector.broadcast %85 : vector<16x1xf32> to vector<16x16xf32>
    %87 = arith.mulf %82, %86 : vector<16x16xf32>
    %cst_22 = arith.constant dense<0.000000e+00> : vector<16x8xf32>
    %88 = tpu.matmul %87, %75, %cst_22 {dimension_numbers = #tpu.dot_dimension_numbers<[1], [0], [0], [1], [0, 0, 1, 1], [], []>} : vector<16x16xf32>, vector<16x8xf32>, vector<16x8xf32> -> vector<16x8xf32>
    %89 = vector.extract_strided_slice %72 {offsets = [0, 8], sizes = [16, 8], strides = [1, 1]} : vector<16x128xf32> to vector<16x8xf32>
    %90 = vector.extract_strided_slice %72 {offsets = [0, 40], sizes = [16, 8], strides = [1, 1]} : vector<16x128xf32> to vector<16x8xf32>
    %91 = vector.extract_strided_slice %72 {offsets = [0, 72], sizes = [16, 8], strides = [1, 1]} : vector<16x128xf32> to vector<16x8xf32>
    %cst_23 = arith.constant dense<0.000000e+00> : vector<16x16xf32>
    %92 = tpu.matmul %89, %90, %cst_23 {dimension_numbers = #tpu.dot_dimension_numbers<[1], [1], [0], [0], [0, 0, 1, 0], [], []>} : vector<16x8xf32>, vector<16x8xf32>, vector<16x16xf32> -> vector<16x16xf32>
    %93 = arith.addf %92, %29 : vector<16x16xf32>
    %cst_24 = arith.constant dense<0xFF800000> : vector<16xf32>
    %94 = vector.multi_reduction <maximumf>, %93, %cst_24 [1] : vector<16x16xf32> to vector<16xf32>
    %95 = vector.shape_cast %94 : vector<16xf32> to vector<16x1xf32>
    %96 = vector.broadcast %95 : vector<16x1xf32> to vector<16x16xf32>
    %97 = arith.subf %93, %96 : vector<16x16xf32>
    %98 = math.exp %97 : vector<16x16xf32>
    %cst_25 = arith.constant dense<0.000000e+00> : vector<16xf32>
    %99 = vector.multi_reduction <add>, %98, %cst_25 [1] : vector<16x16xf32> to vector<16xf32>
    %100 = vector.shape_cast %99 : vector<16xf32> to vector<16x1xf32>
    %101 = tpu.reciprocal %100 {approx = true} : vector<16x1xf32> -> vector<16x1xf32>
    %102 = vector.broadcast %101 : vector<16x1xf32> to vector<16x16xf32>
    %103 = arith.mulf %98, %102 : vector<16x16xf32>
    %cst_26 = arith.constant dense<0.000000e+00> : vector<16x8xf32>
    %104 = tpu.matmul %103, %91, %cst_26 {dimension_numbers = #tpu.dot_dimension_numbers<[1], [0], [0], [1], [0, 0, 1, 1], [], []>} : vector<16x16xf32>, vector<16x8xf32>, vector<16x8xf32> -> vector<16x8xf32>
    %105 = vector.extract_strided_slice %72 {offsets = [0, 16], sizes = [16, 8], strides = [1, 1]} : vector<16x128xf32> to vector<16x8xf32>
    %106 = vector.extract_strided_slice %72 {offsets = [0, 48], sizes = [16, 8], strides = [1, 1]} : vector<16x128xf32> to vector<16x8xf32>
    %107 = vector.extract_strided_slice %72 {offsets = [0, 80], sizes = [16, 8], strides = [1, 1]} : vector<16x128xf32> to vector<16x8xf32>
    %cst_27 = arith.constant dense<0.000000e+00> : vector<16x16xf32>
    %108 = tpu.matmul %105, %106, %cst_27 {dimension_numbers = #tpu.dot_dimension_numbers<[1], [1], [0], [0], [0, 0, 1, 0], [], []>} : vector<16x8xf32>, vector<16x8xf32>, vector<16x16xf32> -> vector<16x16xf32>
    %109 = arith.addf %108, %29 : vector<16x16xf32>
    %cst_28 = arith.constant dense<0xFF800000> : vector<16xf32>
    %110 = vector.multi_reduction <maximumf>, %109, %cst_28 [1] : vector<16x16xf32> to vector<16xf32>
    %111 = vector.shape_cast %110 : vector<16xf32> to vector<16x1xf32>
    %112 = vector.broadcast %111 : vector<16x1xf32> to vector<16x16xf32>
    %113 = arith.subf %109, %112 : vector<16x16xf32>
    %114 = math.exp %113 : vector<16x16xf32>
    %cst_29 = arith.constant dense<0.000000e+00> : vector<16xf32>
    %115 = vector.multi_reduction <add>, %114, %cst_29 [1] : vector<16x16xf32> to vector<16xf32>
    %116 = vector.shape_cast %115 : vector<16xf32> to vector<16x1xf32>
    %117 = tpu.reciprocal %116 {approx = true} : vector<16x1xf32> -> vector<16x1xf32>
    %118 = vector.broadcast %117 : vector<16x1xf32> to vector<16x16xf32>
    %119 = arith.mulf %114, %118 : vector<16x16xf32>
    %cst_30 = arith.constant dense<0.000000e+00> : vector<16x8xf32>
    %120 = tpu.matmul %119, %107, %cst_30 {dimension_numbers = #tpu.dot_dimension_numbers<[1], [0], [0], [1], [0, 0, 1, 1], [], []>} : vector<16x16xf32>, vector<16x8xf32>, vector<16x8xf32> -> vector<16x8xf32>
    %121 = vector.extract_strided_slice %72 {offsets = [0, 24], sizes = [16, 8], strides = [1, 1]} : vector<16x128xf32> to vector<16x8xf32>
    %122 = vector.extract_strided_slice %72 {offsets = [0, 56], sizes = [16, 8], strides = [1, 1]} : vector<16x128xf32> to vector<16x8xf32>
    %123 = vector.extract_strided_slice %72 {offsets = [0, 88], sizes = [16, 8], strides = [1, 1]} : vector<16x128xf32> to vector<16x8xf32>
    %cst_31 = arith.constant dense<0.000000e+00> : vector<16x16xf32>
    %124 = tpu.matmul %121, %122, %cst_31 {dimension_numbers = #tpu.dot_dimension_numbers<[1], [1], [0], [0], [0, 0, 1, 0], [], []>} : vector<16x8xf32>, vector<16x8xf32>, vector<16x16xf32> -> vector<16x16xf32>
    %125 = arith.addf %124, %29 : vector<16x16xf32>
    %cst_32 = arith.constant dense<0xFF800000> : vector<16xf32>
    %126 = vector.multi_reduction <maximumf>, %125, %cst_32 [1] : vector<16x16xf32> to vector<16xf32>
    %127 = vector.shape_cast %126 : vector<16xf32> to vector<16x1xf32>
    %128 = vector.broadcast %127 : vector<16x1xf32> to vector<16x16xf32>
    %129 = arith.subf %125, %128 : vector<16x16xf32>
    %130 = math.exp %129 : vector<16x16xf32>
    %cst_33 = arith.constant dense<0.000000e+00> : vector<16xf32>
    %131 = vector.multi_reduction <add>, %130, %cst_33 [1] : vector<16x16xf32> to vector<16xf32>
    %132 = vector.shape_cast %131 : vector<16xf32> to vector<16x1xf32>
    %133 = tpu.reciprocal %132 {approx = true} : vector<16x1xf32> -> vector<16x1xf32>
    %134 = vector.broadcast %133 : vector<16x1xf32> to vector<16x16xf32>
    %135 = arith.mulf %130, %134 : vector<16x16xf32>
    %cst_34 = arith.constant dense<0.000000e+00> : vector<16x8xf32>
    %136 = tpu.matmul %135, %123, %cst_34 {dimension_numbers = #tpu.dot_dimension_numbers<[1], [0], [0], [1], [0, 0, 1, 1], [], []>} : vector<16x16xf32>, vector<16x8xf32>, vector<16x8xf32> -> vector<16x8xf32>
    %137 = tpu.concatenate %88, %104, %120, %136 in 1 : vector<16x8xf32>, vector<16x8xf32>, vector<16x8xf32>, vector<16x8xf32> -> vector<16x32xf32>
    %cst_35 = arith.constant dense<0.000000e+00> : vector<16x32xf32>
    %138 = tpu.matmul %137, %60, %cst_35 {dimension_numbers = #tpu.dot_dimension_numbers<[1], [0], [0], [1], [0, 0, 1, 1], [], []>} : vector<16x32xf32>, vector<32x32xf32>, vector<16x32xf32> -> vector<16x32xf32>
    %139 = vector.broadcast %61 : vector<1x32xf32> to vector<16x32xf32>
    %140 = arith.addf %138, %139 : vector<16x32xf32>
    %141 = arith.addf %140, %55 : vector<16x32xf32>
    %cst_36 = arith.constant dense<0.000000e+00> : vector<16xf32>
    %142 = vector.multi_reduction <add>, %141, %cst_36 [1] : vector<16x32xf32> to vector<16xf32>
    %143 = vector.shape_cast %142 : vector<16xf32> to vector<16x1xf32>
    %cst_37 = arith.constant 3.200000e+01 : f32
    %144 = vector.broadcast %cst_37 : f32 to vector<16x1xf32>
    %145 = arith.divf %143, %144 : vector<16x1xf32>
    %146 = vector.broadcast %145 : vector<16x1xf32> to vector<16x32xf32>
    %147 = arith.subf %141, %146 : vector<16x32xf32>
    %148 = arith.mulf %147, %147 : vector<16x32xf32>
    %cst_38 = arith.constant dense<0.000000e+00> : vector<16xf32>
    %149 = vector.multi_reduction <add>, %148, %cst_38 [1] : vector<16x32xf32> to vector<16xf32>
    %150 = vector.shape_cast %149 : vector<16xf32> to vector<16x1xf32>
    %cst_39 = arith.constant 3.200000e+01 : f32
    %151 = vector.broadcast %cst_39 : f32 to vector<16x1xf32>
    %152 = arith.divf %150, %151 : vector<16x1xf32>
    %153 = vector.broadcast %145 : vector<16x1xf32> to vector<16x32xf32>
    %154 = arith.subf %141, %153 : vector<16x32xf32>
    %cst_40 = arith.constant 9.99999996E-13 : f32
    %155 = vector.broadcast %cst_40 : f32 to vector<16x1xf32>
    %156 = arith.addf %152, %155 : vector<16x1xf32>
    %157 = math.rsqrt %156 : vector<16x1xf32>
    %158 = vector.broadcast %157 : vector<16x1xf32> to vector<16x32xf32>
    %159 = arith.mulf %154, %158 : vector<16x32xf32>
    %160 = vector.broadcast %62 : vector<1x32xf32> to vector<16x32xf32>
    %161 = arith.mulf %159, %160 : vector<16x32xf32>
    %162 = vector.broadcast %63 : vector<1x32xf32> to vector<16x32xf32>
    %163 = arith.addf %161, %162 : vector<16x32xf32>
    %cst_41 = arith.constant dense<0.000000e+00> : vector<16x64xf32>
    %164 = tpu.matmul %163, %64, %cst_41 {dimension_numbers = #tpu.dot_dimension_numbers<[1], [0], [0], [1], [0, 0, 1, 1], [], []>} : vector<16x32xf32>, vector<32x64xf32>, vector<16x64xf32> -> vector<16x64xf32>
    %165 = vector.broadcast %66 : vector<1x64xf32> to vector<16x64xf32>
    %166 = arith.addf %164, %165 : vector<16x64xf32>
    %cst_42 = arith.constant 5.000000e-01 : f32
    %167 = vector.broadcast %cst_42 : f32 to vector<16x64xf32>
    %168 = arith.mulf %167, %166 : vector<16x64xf32>
    %cst_43 = arith.constant 4.471500e-02 : f32
    %169 = vector.broadcast %cst_43 : f32 to vector<16x64xf32>
    %170 = arith.mulf %169, %166 : vector<16x64xf32>
    %171 = arith.mulf %170, %166 : vector<16x64xf32>
    %172 = arith.mulf %171, %166 : vector<16x64xf32>
    %173 = arith.addf %166, %172 : vector<16x64xf32>
    %cst_44 = arith.constant 0.797884583 : f32
    %174 = vector.broadcast %cst_44 : f32 to vector<16x64xf32>
    %175 = arith.mulf %174, %173 : vector<16x64xf32>
    %176 = math.tanh %175 : vector<16x64xf32>
    %cst_45 = arith.constant 1.000000e+00 : f32
    %177 = vector.broadcast %cst_45 : f32 to vector<16x64xf32>
    %178 = arith.addf %177, %176 : vector<16x64xf32>
    %179 = arith.mulf %168, %178 : vector<16x64xf32>
    %cst_46 = arith.constant dense<0.000000e+00> : vector<16x32xf32>
    %180 = tpu.matmul %179, %65, %cst_46 {dimension_numbers = #tpu.dot_dimension_numbers<[1], [0], [0], [1], [0, 0, 1, 1], [], []>} : vector<16x64xf32>, vector<64x32xf32>, vector<16x32xf32> -> vector<16x32xf32>
    %181 = vector.broadcast %67 : vector<1x32xf32> to vector<16x32xf32>
    %182 = arith.addf %180, %181 : vector<16x32xf32>
    %183 = arith.addf %182, %163 : vector<16x32xf32>
    %cst_47 = arith.constant dense<0.000000e+00> : vector<16xf32>
    %184 = vector.multi_reduction <add>, %183, %cst_47 [1] : vector<16x32xf32> to vector<16xf32>
    %185 = vector.shape_cast %184 : vector<16xf32> to vector<16x1xf32>
    %cst_48 = arith.constant 3.200000e+01 : f32
    %186 = vector.broadcast %cst_48 : f32 to vector<16x1xf32>
    %187 = arith.divf %185, %186 : vector<16x1xf32>
    %188 = vector.broadcast %187 : vector<16x1xf32> to vector<16x32xf32>
    %189 = arith.subf %183, %188 : vector<16x32xf32>
    %190 = arith.mulf %189, %189 : vector<16x32xf32>
    %cst_49 = arith.constant dense<0.000000e+00> : vector<16xf32>
    %191 = vector.multi_reduction <add>, %190, %cst_49 [1] : vector<16x32xf32> to vector<16xf32>
    %192 = vector.shape_cast %191 : vector<16xf32> to vector<16x1xf32>
    %cst_50 = arith.constant 3.200000e+01 : f32
    %193 = vector.broadcast %cst_50 : f32 to vector<16x1xf32>
    %194 = arith.divf %192, %193 : vector<16x1xf32>
    %195 = vector.broadcast %187 : vector<16x1xf32> to vector<16x32xf32>
    %196 = arith.subf %183, %195 : vector<16x32xf32>
    %cst_51 = arith.constant 9.99999996E-13 : f32
    %197 = vector.broadcast %cst_51 : f32 to vector<16x1xf32>
    %198 = arith.addf %194, %197 : vector<16x1xf32>
    %199 = math.rsqrt %198 : vector<16x1xf32>
    %200 = vector.broadcast %199 : vector<16x1xf32> to vector<16x32xf32>
    %201 = arith.mulf %196, %200 : vector<16x32xf32>
    %202 = vector.broadcast %68 : vector<1x32xf32> to vector<16x32xf32>
    %203 = arith.mulf %201, %202 : vector<16x32xf32>
    %204 = vector.broadcast %69 : vector<1x32xf32> to vector<16x32xf32>
    %205 = arith.addf %203, %204 : vector<16x32xf32>
    %c1 = arith.constant 1 : index
    %c0_52 = arith.constant 0 : index
    %c0_53 = arith.constant 0 : index
    %206 = vector.load %arg2[%c1, %c0_52, %c0_53] : memref<2x104x128xf32, #tpu.memory_space<vmem>>, vector<1x104x128xf32>
    %207 = vector.shape_cast %206 : vector<1x104x128xf32> to vector<104x128xf32>
    %208 = vector.extract_strided_slice %207 {offsets = [0, 0], sizes = [32, 128], strides = [1, 1]} : vector<104x128xf32> to vector<32x128xf32>
    %209 = vector.extract_strided_slice %207 {offsets = [96, 0], sizes = [1, 128], strides = [1, 1]} : vector<104x128xf32> to vector<1x128xf32>
    %210 = vector.extract_strided_slice %207 {offsets = [0, 96], sizes = [32, 32], strides = [1, 1]} : vector<104x128xf32> to vector<32x32xf32>
    %211 = vector.extract_strided_slice %207 {offsets = [97, 0], sizes = [1, 32], strides = [1, 1]} : vector<104x128xf32> to vector<1x32xf32>
    %212 = vector.extract_strided_slice %207 {offsets = [97, 32], sizes = [1, 32], strides = [1, 1]} : vector<104x128xf32> to vector<1x32xf32>
    %213 = vector.extract_strided_slice %207 {offsets = [97, 64], sizes = [1, 32], strides = [1, 1]} : vector<104x128xf32> to vector<1x32xf32>
    %214 = vector.extract_strided_slice %207 {offsets = [32, 0], sizes = [32, 64], strides = [1, 1]} : vector<104x128xf32> to vector<32x64xf32>
    %215 = vector.extract_strided_slice %207 {offsets = [32, 64], sizes = [64, 32], strides = [1, 1]} : vector<104x128xf32> to vector<64x32xf32>
    %216 = vector.extract_strided_slice %207 {offsets = [98, 0], sizes = [1, 64], strides = [1, 1]} : vector<104x128xf32> to vector<1x64xf32>
    %217 = vector.extract_strided_slice %207 {offsets = [98, 64], sizes = [1, 32], strides = [1, 1]} : vector<104x128xf32> to vector<1x32xf32>
    %218 = vector.extract_strided_slice %207 {offsets = [99, 0], sizes = [1, 32], strides = [1, 1]} : vector<104x128xf32> to vector<1x32xf32>
    %219 = vector.extract_strided_slice %207 {offsets = [99, 32], sizes = [1, 32], strides = [1, 1]} : vector<104x128xf32> to vector<1x32xf32>
    %cst_54 = arith.constant dense<0.000000e+00> : vector<16x128xf32>
    %220 = tpu.matmul %205, %208, %cst_54 {dimension_numbers = #tpu.dot_dimension_numbers<[1], [0], [0], [1], [0, 0, 1, 1], [], []>} : vector<16x32xf32>, vector<32x128xf32>, vector<16x128xf32> -> vector<16x128xf32>
    %221 = vector.broadcast %209 : vector<1x128xf32> to vector<16x128xf32>
    %222 = arith.addf %220, %221 : vector<16x128xf32>
    %223 = vector.extract_strided_slice %222 {offsets = [0, 0], sizes = [16, 8], strides = [1, 1]} : vector<16x128xf32> to vector<16x8xf32>
    %224 = vector.extract_strided_slice %222 {offsets = [0, 32], sizes = [16, 8], strides = [1, 1]} : vector<16x128xf32> to vector<16x8xf32>
    %225 = vector.extract_strided_slice %222 {offsets = [0, 64], sizes = [16, 8], strides = [1, 1]} : vector<16x128xf32> to vector<16x8xf32>
    %cst_55 = arith.constant dense<0.000000e+00> : vector<16x16xf32>
    %226 = tpu.matmul %223, %224, %cst_55 {dimension_numbers = #tpu.dot_dimension_numbers<[1], [1], [0], [0], [0, 0, 1, 0], [], []>} : vector<16x8xf32>, vector<16x8xf32>, vector<16x16xf32> -> vector<16x16xf32>
    %227 = arith.addf %226, %29 : vector<16x16xf32>
    %cst_56 = arith.constant dense<0xFF800000> : vector<16xf32>
    %228 = vector.multi_reduction <maximumf>, %227, %cst_56 [1] : vector<16x16xf32> to vector<16xf32>
    %229 = vector.shape_cast %228 : vector<16xf32> to vector<16x1xf32>
    %230 = vector.broadcast %229 : vector<16x1xf32> to vector<16x16xf32>
    %231 = arith.subf %227, %230 : vector<16x16xf32>
    %232 = math.exp %231 : vector<16x16xf32>
    %cst_57 = arith.constant dense<0.000000e+00> : vector<16xf32>
    %233 = vector.multi_reduction <add>, %232, %cst_57 [1] : vector<16x16xf32> to vector<16xf32>
    %234 = vector.shape_cast %233 : vector<16xf32> to vector<16x1xf32>
    %235 = tpu.reciprocal %234 {approx = true} : vector<16x1xf32> -> vector<16x1xf32>
    %236 = vector.broadcast %235 : vector<16x1xf32> to vector<16x16xf32>
    %237 = arith.mulf %232, %236 : vector<16x16xf32>
    %cst_58 = arith.constant dense<0.000000e+00> : vector<16x8xf32>
    %238 = tpu.matmul %237, %225, %cst_58 {dimension_numbers = #tpu.dot_dimension_numbers<[1], [0], [0], [1], [0, 0, 1, 1], [], []>} : vector<16x16xf32>, vector<16x8xf32>, vector<16x8xf32> -> vector<16x8xf32>
    %239 = vector.extract_strided_slice %222 {offsets = [0, 8], sizes = [16, 8], strides = [1, 1]} : vector<16x128xf32> to vector<16x8xf32>
    %240 = vector.extract_strided_slice %222 {offsets = [0, 40], sizes = [16, 8], strides = [1, 1]} : vector<16x128xf32> to vector<16x8xf32>
    %241 = vector.extract_strided_slice %222 {offsets = [0, 72], sizes = [16, 8], strides = [1, 1]} : vector<16x128xf32> to vector<16x8xf32>
    %cst_59 = arith.constant dense<0.000000e+00> : vector<16x16xf32>
    %242 = tpu.matmul %239, %240, %cst_59 {dimension_numbers = #tpu.dot_dimension_numbers<[1], [1], [0], [0], [0, 0, 1, 0], [], []>} : vector<16x8xf32>, vector<16x8xf32>, vector<16x16xf32> -> vector<16x16xf32>
    %243 = arith.addf %242, %29 : vector<16x16xf32>
    %cst_60 = arith.constant dense<0xFF800000> : vector<16xf32>
    %244 = vector.multi_reduction <maximumf>, %243, %cst_60 [1] : vector<16x16xf32> to vector<16xf32>
    %245 = vector.shape_cast %244 : vector<16xf32> to vector<16x1xf32>
    %246 = vector.broadcast %245 : vector<16x1xf32> to vector<16x16xf32>
    %247 = arith.subf %243, %246 : vector<16x16xf32>
    %248 = math.exp %247 : vector<16x16xf32>
    %cst_61 = arith.constant dense<0.000000e+00> : vector<16xf32>
    %249 = vector.multi_reduction <add>, %248, %cst_61 [1] : vector<16x16xf32> to vector<16xf32>
    %250 = vector.shape_cast %249 : vector<16xf32> to vector<16x1xf32>
    %251 = tpu.reciprocal %250 {approx = true} : vector<16x1xf32> -> vector<16x1xf32>
    %252 = vector.broadcast %251 : vector<16x1xf32> to vector<16x16xf32>
    %253 = arith.mulf %248, %252 : vector<16x16xf32>
    %cst_62 = arith.constant dense<0.000000e+00> : vector<16x8xf32>
    %254 = tpu.matmul %253, %241, %cst_62 {dimension_numbers = #tpu.dot_dimension_numbers<[1], [0], [0], [1], [0, 0, 1, 1], [], []>} : vector<16x16xf32>, vector<16x8xf32>, vector<16x8xf32> -> vector<16x8xf32>
    %255 = vector.extract_strided_slice %222 {offsets = [0, 16], sizes = [16, 8], strides = [1, 1]} : vector<16x128xf32> to vector<16x8xf32>
    %256 = vector.extract_strided_slice %222 {offsets = [0, 48], sizes = [16, 8], strides = [1, 1]} : vector<16x128xf32> to vector<16x8xf32>
    %257 = vector.extract_strided_slice %222 {offsets = [0, 80], sizes = [16, 8], strides = [1, 1]} : vector<16x128xf32> to vector<16x8xf32>
    %cst_63 = arith.constant dense<0.000000e+00> : vector<16x16xf32>
    %258 = tpu.matmul %255, %256, %cst_63 {dimension_numbers = #tpu.dot_dimension_numbers<[1], [1], [0], [0], [0, 0, 1, 0], [], []>} : vector<16x8xf32>, vector<16x8xf32>, vector<16x16xf32> -> vector<16x16xf32>
    %259 = arith.addf %258, %29 : vector<16x16xf32>
    %cst_64 = arith.constant dense<0xFF800000> : vector<16xf32>
    %260 = vector.multi_reduction <maximumf>, %259, %cst_64 [1] : vector<16x16xf32> to vector<16xf32>
    %261 = vector.shape_cast %260 : vector<16xf32> to vector<16x1xf32>
    %262 = vector.broadcast %261 : vector<16x1xf32> to vector<16x16xf32>
    %263 = arith.subf %259, %262 : vector<16x16xf32>
    %264 = math.exp %263 : vector<16x16xf32>
    %cst_65 = arith.constant dense<0.000000e+00> : vector<16xf32>
    %265 = vector.multi_reduction <add>, %264, %cst_65 [1] : vector<16x16xf32> to vector<16xf32>
    %266 = vector.shape_cast %265 : vector<16xf32> to vector<16x1xf32>
    %267 = tpu.reciprocal %266 {approx = true} : vector<16x1xf32> -> vector<16x1xf32>
    %268 = vector.broadcast %267 : vector<16x1xf32> to vector<16x16xf32>
    %269 = arith.mulf %264, %268 : vector<16x16xf32>
    %cst_66 = arith.constant dense<0.000000e+00> : vector<16x8xf32>
    %270 = tpu.matmul %269, %257, %cst_66 {dimension_numbers = #tpu.dot_dimension_numbers<[1], [0], [0], [1], [0, 0, 1, 1], [], []>} : vector<16x16xf32>, vector<16x8xf32>, vector<16x8xf32> -> vector<16x8xf32>
    %271 = vector.extract_strided_slice %222 {offsets = [0, 24], sizes = [16, 8], strides = [1, 1]} : vector<16x128xf32> to vector<16x8xf32>
    %272 = vector.extract_strided_slice %222 {offsets = [0, 56], sizes = [16, 8], strides = [1, 1]} : vector<16x128xf32> to vector<16x8xf32>
    %273 = vector.extract_strided_slice %222 {offsets = [0, 88], sizes = [16, 8], strides = [1, 1]} : vector<16x128xf32> to vector<16x8xf32>
    %cst_67 = arith.constant dense<0.000000e+00> : vector<16x16xf32>
    %274 = tpu.matmul %271, %272, %cst_67 {dimension_numbers = #tpu.dot_dimension_numbers<[1], [1], [0], [0], [0, 0, 1, 0], [], []>} : vector<16x8xf32>, vector<16x8xf32>, vector<16x16xf32> -> vector<16x16xf32>
    %275 = arith.addf %274, %29 : vector<16x16xf32>
    %cst_68 = arith.constant dense<0xFF800000> : vector<16xf32>
    %276 = vector.multi_reduction <maximumf>, %275, %cst_68 [1] : vector<16x16xf32> to vector<16xf32>
    %277 = vector.shape_cast %276 : vector<16xf32> to vector<16x1xf32>
    %278 = vector.broadcast %277 : vector<16x1xf32> to vector<16x16xf32>
    %279 = arith.subf %275, %278 : vector<16x16xf32>
    %280 = math.exp %279 : vector<16x16xf32>
    %cst_69 = arith.constant dense<0.000000e+00> : vector<16xf32>
    %281 = vector.multi_reduction <add>, %280, %cst_69 [1] : vector<16x16xf32> to vector<16xf32>
    %282 = vector.shape_cast %281 : vector<16xf32> to vector<16x1xf32>
    %283 = tpu.reciprocal %282 {approx = true} : vector<16x1xf32> -> vector<16x1xf32>
    %284 = vector.broadcast %283 : vector<16x1xf32> to vector<16x16xf32>
    %285 = arith.mulf %280, %284 : vector<16x16xf32>
    %cst_70 = arith.constant dense<0.000000e+00> : vector<16x8xf32>
    %286 = tpu.matmul %285, %273, %cst_70 {dimension_numbers = #tpu.dot_dimension_numbers<[1], [0], [0], [1], [0, 0, 1, 1], [], []>} : vector<16x16xf32>, vector<16x8xf32>, vector<16x8xf32> -> vector<16x8xf32>
    %287 = tpu.concatenate %238, %254, %270, %286 in 1 : vector<16x8xf32>, vector<16x8xf32>, vector<16x8xf32>, vector<16x8xf32> -> vector<16x32xf32>
    %cst_71 = arith.constant dense<0.000000e+00> : vector<16x32xf32>
    %288 = tpu.matmul %287, %210, %cst_71 {dimension_numbers = #tpu.dot_dimension_numbers<[1], [0], [0], [1], [0, 0, 1, 1], [], []>} : vector<16x32xf32>, vector<32x32xf32>, vector<16x32xf32> -> vector<16x32xf32>
    %289 = vector.broadcast %211 : vector<1x32xf32> to vector<16x32xf32>
    %290 = arith.addf %288, %289 : vector<16x32xf32>
    %291 = arith.addf %290, %205 : vector<16x32xf32>
    %cst_72 = arith.constant dense<0.000000e+00> : vector<16xf32>
    %292 = vector.multi_reduction <add>, %291, %cst_72 [1] : vector<16x32xf32> to vector<16xf32>
    %293 = vector.shape_cast %292 : vector<16xf32> to vector<16x1xf32>
    %cst_73 = arith.constant 3.200000e+01 : f32
    %294 = vector.broadcast %cst_73 : f32 to vector<16x1xf32>
    %295 = arith.divf %293, %294 : vector<16x1xf32>
    %296 = vector.broadcast %295 : vector<16x1xf32> to vector<16x32xf32>
    %297 = arith.subf %291, %296 : vector<16x32xf32>
    %298 = arith.mulf %297, %297 : vector<16x32xf32>
    %cst_74 = arith.constant dense<0.000000e+00> : vector<16xf32>
    %299 = vector.multi_reduction <add>, %298, %cst_74 [1] : vector<16x32xf32> to vector<16xf32>
    %300 = vector.shape_cast %299 : vector<16xf32> to vector<16x1xf32>
    %cst_75 = arith.constant 3.200000e+01 : f32
    %301 = vector.broadcast %cst_75 : f32 to vector<16x1xf32>
    %302 = arith.divf %300, %301 : vector<16x1xf32>
    %303 = vector.broadcast %295 : vector<16x1xf32> to vector<16x32xf32>
    %304 = arith.subf %291, %303 : vector<16x32xf32>
    %cst_76 = arith.constant 9.99999996E-13 : f32
    %305 = vector.broadcast %cst_76 : f32 to vector<16x1xf32>
    %306 = arith.addf %302, %305 : vector<16x1xf32>
    %307 = math.rsqrt %306 : vector<16x1xf32>
    %308 = vector.broadcast %307 : vector<16x1xf32> to vector<16x32xf32>
    %309 = arith.mulf %304, %308 : vector<16x32xf32>
    %310 = vector.broadcast %212 : vector<1x32xf32> to vector<16x32xf32>
    %311 = arith.mulf %309, %310 : vector<16x32xf32>
    %312 = vector.broadcast %213 : vector<1x32xf32> to vector<16x32xf32>
    %313 = arith.addf %311, %312 : vector<16x32xf32>
    %cst_77 = arith.constant dense<0.000000e+00> : vector<16x64xf32>
    %314 = tpu.matmul %313, %214, %cst_77 {dimension_numbers = #tpu.dot_dimension_numbers<[1], [0], [0], [1], [0, 0, 1, 1], [], []>} : vector<16x32xf32>, vector<32x64xf32>, vector<16x64xf32> -> vector<16x64xf32>
    %315 = vector.broadcast %216 : vector<1x64xf32> to vector<16x64xf32>
    %316 = arith.addf %314, %315 : vector<16x64xf32>
    %cst_78 = arith.constant 5.000000e-01 : f32
    %317 = vector.broadcast %cst_78 : f32 to vector<16x64xf32>
    %318 = arith.mulf %317, %316 : vector<16x64xf32>
    %cst_79 = arith.constant 4.471500e-02 : f32
    %319 = vector.broadcast %cst_79 : f32 to vector<16x64xf32>
    %320 = arith.mulf %319, %316 : vector<16x64xf32>
    %321 = arith.mulf %320, %316 : vector<16x64xf32>
    %322 = arith.mulf %321, %316 : vector<16x64xf32>
    %323 = arith.addf %316, %322 : vector<16x64xf32>
    %cst_80 = arith.constant 0.797884583 : f32
    %324 = vector.broadcast %cst_80 : f32 to vector<16x64xf32>
    %325 = arith.mulf %324, %323 : vector<16x64xf32>
    %326 = math.tanh %325 : vector<16x64xf32>
    %cst_81 = arith.constant 1.000000e+00 : f32
    %327 = vector.broadcast %cst_81 : f32 to vector<16x64xf32>
    %328 = arith.addf %327, %326 : vector<16x64xf32>
    %329 = arith.mulf %318, %328 : vector<16x64xf32>
    %cst_82 = arith.constant dense<0.000000e+00> : vector<16x32xf32>
    %330 = tpu.matmul %329, %215, %cst_82 {dimension_numbers = #tpu.dot_dimension_numbers<[1], [0], [0], [1], [0, 0, 1, 1], [], []>} : vector<16x64xf32>, vector<64x32xf32>, vector<16x32xf32> -> vector<16x32xf32>
    %331 = vector.broadcast %217 : vector<1x32xf32> to vector<16x32xf32>
    %332 = arith.addf %330, %331 : vector<16x32xf32>
    %333 = arith.addf %332, %313 : vector<16x32xf32>
    %cst_83 = arith.constant dense<0.000000e+00> : vector<16xf32>
    %334 = vector.multi_reduction <add>, %333, %cst_83 [1] : vector<16x32xf32> to vector<16xf32>
    %335 = vector.shape_cast %334 : vector<16xf32> to vector<16x1xf32>
    %cst_84 = arith.constant 3.200000e+01 : f32
    %336 = vector.broadcast %cst_84 : f32 to vector<16x1xf32>
    %337 = arith.divf %335, %336 : vector<16x1xf32>
    %338 = vector.broadcast %337 : vector<16x1xf32> to vector<16x32xf32>
    %339 = arith.subf %333, %338 : vector<16x32xf32>
    %340 = arith.mulf %339, %339 : vector<16x32xf32>
    %cst_85 = arith.constant dense<0.000000e+00> : vector<16xf32>
    %341 = vector.multi_reduction <add>, %340, %cst_85 [1] : vector<16x32xf32> to vector<16xf32>
    %342 = vector.shape_cast %341 : vector<16xf32> to vector<16x1xf32>
    %cst_86 = arith.constant 3.200000e+01 : f32
    %343 = vector.broadcast %cst_86 : f32 to vector<16x1xf32>
    %344 = arith.divf %342, %343 : vector<16x1xf32>
    %345 = vector.broadcast %337 : vector<16x1xf32> to vector<16x32xf32>
    %346 = arith.subf %333, %345 : vector<16x32xf32>
    %cst_87 = arith.constant 9.99999996E-13 : f32
    %347 = vector.broadcast %cst_87 : f32 to vector<16x1xf32>
    %348 = arith.addf %344, %347 : vector<16x1xf32>
    %349 = math.rsqrt %348 : vector<16x1xf32>
    %350 = vector.broadcast %349 : vector<16x1xf32> to vector<16x32xf32>
    %351 = arith.mulf %346, %350 : vector<16x32xf32>
    %352 = vector.broadcast %218 : vector<1x32xf32> to vector<16x32xf32>
    %353 = arith.mulf %351, %352 : vector<16x32xf32>
    %354 = vector.broadcast %219 : vector<1x32xf32> to vector<16x32xf32>
    %355 = arith.addf %353, %354 : vector<16x32xf32>
    %cst_88 = arith.constant 0.000000e+00 : f32
    %356 = vector.broadcast %cst_88 : f32 to vector<16x96xf32>
    %357 = tpu.concatenate %355, %356 in 1 : vector<16x32xf32>, vector<16x96xf32> -> vector<16x128xf32>
    %c0_89 = arith.constant 0 : index
    %c0_90 = arith.constant 0 : index
    %358 = vector.load %arg3[%c0_89, %c0_90] : memref<16x128xf32, #tpu.memory_space<vmem>>, vector<16x128xf32>
    tpu.vector_store %arg3[%c0_89, %c0_90], %357 {strides = array<i32>} : memref<16x128xf32, #tpu.memory_space<vmem>>, vector<16x128xf32>,
    return
  }
}

</mosaic_0001>

<bundles_post_ra>
// kernel: _lambda_.1
= control target key start
LH: loop header
LB: loop body
LE: loop exit
PB: predicated region body
PF: predicated region fallthrough
CT: control target
= control target key end

     0   :  { %8 = vsyncpa [#allocation3], 0  ;;  %s4281_s0 = inlined_call_operand.vmem [shape: f32[16,128], index: 0, kind: input, shape index: {}]   ;;  %s4282_s1 = inlined_call_operand.vmem [shape: f32[24,128], index: 1, kind: input, shape index: {}]   ;;  %s4283_s2 = inlined_call_operand.hbm [shape: f32[2,104,128], index: 2, kind: input, shape index: {}]   ;;  %s4284_s3 = inlined_call_operand.hbm [shape: f32[16,128], index: 3, kind: output, shape index: {}]  }
   0x1   :  { %9 = vsyncpa [#allocation4], 0  ;;  %s3774_s12 = smov [#allocation2]   ;;  %s3726_s16 = scalar_lea.hbm %s4283_s2, 3328 }
   0x2   :  { %s19_s13 = sshll.u32 %s3774_s12, 4  ;;  %p3727_p0 = scmp.ne.s32.totalorder %s4283_s2, %s3726_s16  ;;  %s20_s13 = int_to_ptr.vmem [resolvable:$true] %s19_s13 }
   0x3   :  { %p3730_p1 = scmp.lt.u32.totalorder %s3726_s16, %s4283_s2 }
   0x5   :  { %p3732_p2 = pnand %p3730_p1, %p3727_p0 }
   0x7   :  { %3735 = shalt.err (!%p3732_p2)
}
   0x8   :  { %s3736_s21 = scalar_lea.vmem %s20_s13, 3328  ;;  %p3741_p4 = scmp.lt.s32.totalorder %s20_s13, %s20_s13 }
   0x9   :  { %p3737_p3 = scmp.ne.s32.totalorder %s20_s13, %s3736_s21  ;;  %p3742_p5 = scmp.lt.s32.totalorder %s3736_s21, %s3736_s21 }
   0xb   :  { %p3743_p6 = por %p3742_p5, %p3741_p4 }
   0xd   :  { %p3744_p7 = pnand %p3743_p6, %p3737_p3 }
   0xf   :  { %3747 = shalt.err (!%p3744_p7)
}
  0x10   :  { %s3775_s22 = smov 128   ;;  %s3776_s23 = smov 8  }
  0x11   :  { %25 = dma.hbm_to_vmem [thread:$0]  %s4283_s2, 3328, %s20_s13, [#allocation3], %s3775_s22, %s3775_s22, %s3776_s23  }
  0x12   :  { %3770 = dma.done.wait [#allocation3], 3328  }
  0x13   :  { %3771 = vsyncadd [#allocation3], 4294963968  ;;  %vm34_vm0 = vcmask 130048   ;;  %v3831_v0 = vld [vmem:[%s4282_s1] sm:$0xff]  ;;  %v3836_v1 = vld [vmem:[%s4282_s1 + $0x8] sm:$0xff]  ;;  %s3777_s2 = smov 80   ;;  %v67_v5 = vlaneseq }
  0x14   :  { %v29_v2 = vld [vmem:[%s4281_s0] sm:$0xff]  ;;  %v3311_v3 = vpack.c.bf16 %v3836_v1, %v3831_v0  ;;  %164 = vrot.lane.b32.xlu0 %v3831_v0, %s3777_s2  ;;  %v3849_v4 = vld [vmem:[%s4281_s0 + $0x8] sm:$0xff]  ;;  %v3863_v8 = vld [vmem:[%s4282_s1 + $0x10] sm:$0xff]  ;;  %vm172_vm1 = vcmask 261120   ;;  %s3778_s0 = smov 96   ;;  %s3779_s1 = smov 64  }
  0x15   :  { %3092 = vmatprep.mubr.msk.f32.mxu0 %vm34_vm0, %v29_v2  ;;  %v3855_v6 = vshrl.u32 %v67_v5, 7  ;;  %v3873_v30 = vld [vmem:[#allocation2] sm:$0xff]  ;;  %v3875_v31 = vld [vmem:[#allocation2 + $0x8] sm:$0xff]  ;;  %v3879_v33 = vld [vmem:[#allocation2 + $0x10] sm:$0xff]  ;;  %v35_v36 = vsel %vm34_vm0, %v29_v2, 0.0  ;;  %vm323_vm2 = vcmask 64512  }
  0x16   :  { %3312 = vmatprep.subr.bf16.mxu0 %v3311_v3  ;;  %v3315_v32 = vpack.c.bf16 %v3875_v31, %v3873_v30  ;;  %v3881_v34 = vld [vmem:[#allocation2 + $0x18] sm:$0xff]  ;;  %v3894_v53 = vld [vmem:[#allocation2 + $0x60] sm:$0xff]  ;;  %s3780_s9 = smov 120   ;;  %s3781_s10 = smov 88   ;;  %v38_v60 = vsel %vm34_vm0, %v3849_v4, 0.0  ;;  %vm3920_vm3 = vmpackc.low %vm323_vm2, %vm323_vm2  ;;  %vm47_vm5 = vcmp.eq.f32.partialorder %v3831_v0, 0.0 }
  0x17   :  { %3314 = vmatpush3.bf16.msra.mxu0 %v3311_v3  ;;  %v3858_v7 = vsub.s32 0, %v3855_v6  ;;  %v3319_v35 = vpack.c.bf16 %v3881_v34, %v3879_v33  ;;  %vm51_vm6 = vcmask 392448   ;;  %vm48_vm7 = vcmp.eq.f32.partialorder %v3836_v1, 0.0  ;;  %s3783_s11 = smov 32   ;;  %s3784_s12 = smov 56  }
  0x18   :  { %166 = vrot.lane.b32.xlu0 %v3836_v1, %s3777_s2  ;;  %3316 = vmatprep.subr.bf16.mxu0 %v3315_v32  ;;  %s3785_s13 = smov 112   ;;  %s3786_s14 = smov 48   ;;  %vm1144_vm10 = vcmask 195584   ;;  %vm1426_vm11 = vcmask 523264  }
  0x19   :  { %v80_v10 = vrot.slane %v3863_v8, %v3858_v7  ;;  %v227_v54 = vrot.slane %v3894_v53, %v3858_v7  ;;  %s3787_s15 = smov 104   ;;  %s3788_s16 = smov 72  }
  0x1a   :  { %3093 = vmatmul.mubr.msk.f32.vlgmr.msra.gmra.mrb[0].mxu0 %vm34_vm0, %v3849_v4  ;;  %s3789_s17 = smov 40   ;;  %s3790_s18 = smov 16  }
  0x1b   :  { %3318 = vmatpush3.bf16.msra.mxu0 %v3315_v32  ;;  %s3791_s19 = smov 24   ;;  %s3792_s20 = smov [#allocation5]  }
  0x1c   :  { %3320 = vmatprep.subr.bf16.mxu0 %v3319_v35  ;;  %s2884_s21 = sshll.u32 %s3792_s20, 4  ;;  %s2885_s21 = int_to_ptr.vmem [resolvable:$true] %s2884_s21 }
  0x1d   :  { %s3748_s24 = scalar_lea.vmem %s2885_s21, 256  ;;  %p3753_p9 = scmp.lt.s32.totalorder %s2885_s21, %s2885_s21 }
  0x1e   :  { %p3749_p8 = scmp.ne.s32.totalorder %s2885_s21, %s3748_s24  ;;  %p3754_p10 = scmp.lt.s32.totalorder %s3748_s24, %s3748_s24 }
  0x1f   :  { %3322 = vmatpush3.bf16.msra.mxu0 %v3319_v35 }
  0x20   :  { %p3755_p11 = por %p3754_p10, %p3753_p9 }
  0x22   :  { %p3756_p12 = pnand %p3755_p11, %p3749_p8 }
  0x86   :  { %v165_v9 = vpop.permute.xlu0 %164 }
  0x8a   :  { %v167_v15 = vpop.permute.xlu0 %166 }
  0xed   :  { %v3094_v11 = vpop.f32.mrb[0].mxu0 }
  0xee   :  { %v153_v12 = vpop.f32.mrb[1].mxu0  ;;  %v159_v13 = vadd.f32 %v3094_v11, %v80_v10 }
  0xef   :  { %v154_v14 = vadd.f32 %v153_v12, %v80_v10 }
  0xf0   :  { %v171_v17 = vadd.f32 %v167_v15, %v159_v13 }
  0xf1   :  { %v170_v16 = vadd.f32 %v165_v9, %v154_v14  ;;  %v3782_v14 = vmov 0.0  }
  0xf2   :  { %v176_v19 = vsel %vm172_vm1, %v171_v17, 0.0 }
  0xf3   :  { %v173_v18 = vsel %vm172_vm1, %v170_v16, 0.0 }
  0xf4   :  { %174 = vadd.xlane.f32.xlu1 %v173_v18 }
  0xf8   :  { %177 = vadd.xlane.f32.xlu1 %v176_v19 }
 0x181   :  { %v175_v20 = vpop.xlane.xlu1 %174 }
 0x182   :  { %v180_v21 = vmul.f32 0.03125, %v175_v20 }
 0x184   :  { %v182_v22 = vsub.f32 %v170_v16, %v180_v21 }
 0x185   :  { %v178_v23 = vpop.xlane.xlu1 %177 }
 0x186   :  { %v181_v24 = vmul.f32 0.03125, %v178_v23  ;;  %v184_v25 = vmul.f32 %v182_v22, %v182_v22 }
 0x188   :  { %v183_v26 = vsub.f32 %v171_v17, %v181_v24  ;;  %v186_v27 = vsel %vm172_vm1, %v184_v25, 0.0 }
 0x189   :  { %187 = vadd.xlane.f32.xlu0 %v186_v27 }
 0x18a   :  { %v185_v28 = vmul.f32 %v183_v26, %v183_v26 }
 0x18c   :  { %v189_v29 = vsel %vm172_vm1, %v185_v28, 0.0 }
 0x18d   :  { %190 = vadd.xlane.f32.xlu1 %v189_v29  ;;  %36 = vadd.xlane.f32.xlu0 %v35_v36  ;;  %v3940_v29 = vsub.s32 1, %v3855_v6 }
 0x19e   :  { %201 = vrot.lane.b32.xlu1 %v80_v10, %s3778_s0 }
 0x1a2   :  { %206 = vrot.lane.b32.xlu1 %v80_v10, %s3779_s1 }
 0x216   :  { %v188_v37 = vpop.xlane.xlu0 %187 }
 0x217   :  { %v192_v38 = vmul.f32 0.03125, %v188_v37 }
 0x219   :  { %v194_v39 = vadd.f32 1e-12, %v192_v38 }
 0x21a   :  { %v191_v40 = vpop.xlane.xlu1 %190  ;;  %v37_v4 = vpop.xlane.xlu0 %36 }
 0x21b   :  { %3634 = vrsqrt.f32 %v194_v39  ;;  %v193_v41 = vmul.f32 0.03125, %v191_v40  ;;  %vm41_vm4 = vcmp.ne.f32.partialorder %v37_v4, 0.0 }
 0x21c   :  { %v2896_v15 = vsel %vm41_vm4, 1.0, %v3782_v14 }
 0x21d   :  { %v195_v42 = vadd.f32 1e-12, %v193_v41  ;;  %v49_v16 = vsel %vm47_vm5, %v2896_v15, 0.0 }
 0x21e   :  { %v202_v43 = vpop.permute.xlu1 %201  ;;  %v52_v18 = vsel %vm51_vm6, %v49_v16, 0.0 }
 0x21f   :  { %3636 = vrsqrt.f32 %v195_v42 }
 0x222   :  { %v207_v46 = vpop.permute.xlu1 %206 }
 0x225   :  { %v3635_v44 = vpop.eup %3634 }
 0x226   :  { %v198_v45 = vmul.f32 %v3635_v44, %v182_v22 }
 0x228   :  { %v204_v47 = vmul.f32 %v202_v43, %v198_v45 }
 0x229   :  { %v3637_v48 = vpop.eup %3636 }
 0x22a   :  { %v199_v49 = vmul.f32 %v3637_v48, %v183_v26  ;;  %v3886_v50 = vadd.f32 %v207_v46, %v204_v47 }
 0x22c   :  { %v205_v51 = vmul.f32 %v202_v43, %v199_v49  ;;  %3103 = vmatprep.mubr.msk.f32.mxu0 %vm172_vm1, %v3886_v50 }
 0x22e   :  { %v3890_v52 = vadd.f32 %v207_v46, %v205_v51 }
 0x230   :  { %3104 = vmatmul.mubr.msk.f32.vlgmr.msra.gmra.mrb[2].mxu0 %vm172_vm1, %v3890_v52 }
 0x303   :  { %v3105_v55 = vpop.f32.mrb[2].mxu0 }
 0x304   :  { %v3898_v56 = vadd.f32 %v3105_v55, %v227_v54  ;;  %v300_v57 = vpop.f32.mrb[3].mxu0 }
 0x305   :  { %v3900_v58 = vadd.f32 %v300_v57, %v227_v54 }
 0x307   :  { %3110 = vmatprep.mubr.msk.f32.mxu0 %vm323_vm2, %v3900_v58  ;;  %516 = vrot.lane.b32.xlu0 %v3900_v58, %s3780_s9  ;;  %v3908_v59 = vpack.i.bf16 %v3898_v56, %v3900_v58 }
 0x309   :  { %3495 = vrot.lane.b32.xlu1 %v3908_v59, %s3778_s0 }
 0x30b   :  { %518 = vrot.lane.b32.xlu0 %v3898_v56, %s3780_s9 }
 0x30d   :  { %3500 = vrot.lane.b32.xlu1 %v3908_v59, %s3781_s10 }
 0x331   :  { %39 = vadd.xlane.f32.xlu1 %v38_v60 }
 0x379   :  { %v517_v12 = vpop.permute.xlu0 %516 }
 0x37b   :  { %v3496_v61 = vpop.permute.xlu1 %3495 }
 0x37c   :  { %v3498_v62 = vunpack.i.h.bf16 %v3496_v61  ;;  %v3497_v63 = vunpack.i.l.bf16 %v3496_v61 }
 0x37d   :  { %v519_v13 = vpop.permute.xlu0 %518 }
 0x37e   :  { %v3323_v3 = vpack.c.bf16 %v3498_v62, %v3497_v63 }
 0x37f   :  { %v3501_v5 = vpop.permute.xlu1 %3500 }
 0x380   :  { %v3503_v9 = vunpack.i.h.bf16 %v3501_v5  ;;  %v3502_v10 = vunpack.i.l.bf16 %v3501_v5  ;;  %3325 = vmatprep.subr.msk.bf16.mxu0 %vm3920_vm3, %v3323_v3 }
 0x381   :  { %3328 = vmatpush3.bf16.xpose.msk.msra.mxu0 %vm3920_vm3, %v3323_v3 }
 0x382   :  { %v3333_v11 = vpack.c.bf16 %v3503_v9, %v3502_v10 }
 0x384   :  { %3335 = vmatprep.subr.msk.bf16.mxu0 %vm3920_vm3, %v3333_v11 }
 0x388   :  { %3111 = vmatmul.mubr.msk.f32.vlgmr.msra.gmra.mrb[4].mxu0 %vm323_vm2, %v3898_v56 }
 0x389   :  { %3338 = vmatpush3.bf16.xpose.msk.msra.mxu0 %vm3920_vm3, %v3333_v11  ;;  %3124 = vmatprep.mubr.msk.f32.mxu0 %vm323_vm2, %v517_v12 }
 0x390   :  { %3125 = vmatmul.mubr.msk.f32.vlgmr.msra.gmra.mrb[6].mxu0 %vm323_vm2, %v519_v13 }
 0x3be   :  { %v40_v17 = vpop.xlane.xlu1 %39 }
 0x3bf   :  { %vm42_vm8 = vcmp.ne.f32.partialorder %v40_v17, 0.0 }
 0x3c0   :  { %v2897_v19 = vsel %vm42_vm8, 1.0, %v3782_v14 }
 0x3c1   :  { %v50_v20 = vsel %vm48_vm7, %v2897_v19, 0.0 }
 0x3c2   :  { %v53_v21 = vsel %vm51_vm6, %v50_v20, 0.0 }
 0x3c3   :  { %v54_v22 = vadd.f32 %v53_v21, %v52_v18 }
 0x3c5   :  { %v55_v23 = vrot.slane %v54_v22, 4 }
 0x3c7   :  { %v56_v24 = vadd.f32 %v55_v23, %v54_v22 }
 0x3c9   :  { %v57_v25 = vrot.slane %v56_v24, 2 }
 0x3cb   :  { %v58_v26 = vadd.f32 %v57_v25, %v56_v24 }
 0x3cd   :  { %v59_v27 = vrot.slane %v58_v26, 1 }
 0x3cf   :  { %v60_v28 = vadd.f32 %v59_v27, %v58_v26 }
 0x3d1   :  { %62 = vrot.lane.b32.xlu0 %v60_v28, %s3778_s0 }
 0x443   :  { %v63_v32 = vpop.permute.xlu0 %62 }
 0x444   :  { %vm65_vm9 = vcmp.ge.f32.partialorder %v3863_v8, %v63_v32 }
 0x445   :  { %v66_v35 = vsel %vm65_vm9, -10000.0, %v3782_v14 }
 0x446   :  { %v70_v36 = vrot.slane %v66_v35, %v3940_v29 }
 0x448   :  { %72 = vrot.lane.b32.xlu0 %v70_v36, %s3783_s11 }
 0x45b   :  { %v3112_v37 = vpop.f32.mrb[4].mxu0 }
 0x45c   :  { %v398_v38 = vpop.f32.mrb[5].mxu0 }
 0x463   :  { %v3126_v39 = vpop.f32.mrb[6].mxu0 }
 0x464   :  { %v598_v40 = vpop.f32.mrb[7].mxu0 }
 0x4ba   :  { %v73_v41 = vpop.permute.xlu0 %72 }
 0x4bb   :  { %v75_v42 = vadd.f32 %v73_v41, %v3831_v0  ;;  %v76_v43 = vadd.f32 %v73_v41, %v3836_v1 }
 0x4bd   :  { %319 = vrot.lane.b32.xlu1 %v76_v43, %s3778_s0  ;;  %317 = vrot.lane.b32.xlu0 %v75_v42, %s3778_s0 }
 0x52f   :  { %v3949_v8 = vpop.permute.xlu1 %319  ;;  %v3951_v44 = vpop.permute.xlu0 %317 }
 0x530   :  { %v404_v45 = vadd.f32 %v3112_v37, %v3949_v8  ;;  %v399_v46 = vadd.f32 %v398_v38, %v3951_v44  ;;  %v599_v0 = vadd.f32 %v598_v40, %v3951_v44  ;;  %v604_v49 = vadd.f32 %v3126_v39, %v3949_v8 }
 0x532   :  { %v410_v47 = vsel %vm34_vm0, %v404_v45, -inf  ;;  %v407_v48 = vsel %vm34_vm0, %v399_v46, -inf  ;;  %v607_v1 = vsel %vm34_vm0, %v599_v0, -inf  ;;  %v610_v51 = vsel %vm34_vm0, %v604_v49, -inf }
 0x533   :  { %411 = vmax.xlane.f32.xlu1 %v410_v47  ;;  %408 = vmax.xlane.f32.xlu0 %v407_v48 }
 0x537   :  { %608 = vmax.xlane.f32.xlu0 %v607_v1 }
 0x53b   :  { %611 = vmax.xlane.f32.xlu0 %v610_v51 }
 0x5c0   :  { %v412_v54 = vpop.xlane.xlu1 %411  ;;  %v409_v55 = vpop.xlane.xlu0 %408 }
 0x5c1   :  { %v414_v57 = vsub.f32 %v404_v45, %v412_v54  ;;  %v413_v60 = vsub.f32 %v399_v46, %v409_v55 }
 0x5c3   :  { %v417_v61 = vmul.f32 1.442695, %v414_v57  ;;  %v415_v62 = vmul.f32 1.442695, %v413_v60 }
 0x5c4   :  { %v609_v63 = vpop.xlane.xlu0 %608 }
 0x5c5   :  { %3638 = vpow2.f32 %v417_v61  ;;  %v613_v3 = vsub.f32 %v599_v0, %v609_v63 }
 0x5c6   :  { %3640 = vpow2.f32 %v415_v62 }
 0x5c7   :  { %v615_v5 = vmul.f32 1.442695, %v613_v3 }
 0x5c8   :  { %v612_v9 = vpop.xlane.xlu0 %611 }
 0x5c9   :  { %v614_v10 = vsub.f32 %v604_v49, %v612_v9  ;;  %3642 = vpow2.f32 %v615_v5 }
 0x5cb   :  { %v617_v4 = vmul.f32 1.442695, %v614_v10 }
 0x5cd   :  { %3644 = vpow2.f32 %v617_v4 }
 0x5cf   :  { %v3639_v11 = vpop.eup %3638 }
 0x5d0   :  { %v422_v12 = vsel %vm34_vm0, %v3639_v11, 0.0  ;;  %v3641_v13 = vpop.eup %3640 }
 0x5d1   :  { %423 = vadd.xlane.f32.xlu0 %v422_v12  ;;  %v419_v14 = vsel %vm34_vm0, %v3641_v13, 0.0 }
 0x5d3   :  { %v3643_v15 = vpop.eup %3642 }
 0x5d4   :  { %v619_v17 = vsel %vm34_vm0, %v3643_v15, 0.0 }
 0x5d5   :  { %420 = vadd.xlane.f32.xlu0 %v419_v14 }
 0x5d7   :  { %v3645_v16 = vpop.eup %3644 }
 0x5d8   :  { %v622_v18 = vsel %vm34_vm0, %v3645_v16, 0.0 }
 0x5d9   :  { %620 = vadd.xlane.f32.xlu0 %v619_v17  ;;  %623 = vadd.xlane.f32.xlu1 %v622_v18 }
 0x5ea   :  { %3510 = vrot.lane.b32.xlu1 %v3908_v59, %s3784_s12 }
 0x5ee   :  { %3515 = vrot.lane.b32.xlu1 %v3908_v59, %s3777_s2 }
 0x5ef   :  { %3505 = vrot.lane.b32.xlu0 %v3908_v59, %s3779_s1 }
 0x5f2   :  { %718 = vrot.lane.b32.xlu1 %v3898_v56, %s3785_s13 }
 0x5f3   :  { %716 = vrot.lane.b32.xlu0 %v3900_v58, %s3785_s13 }
 0x65e   :  { %v424_v19 = vpop.xlane.xlu0 %423 }
 0x662   :  { %v421_v20 = vpop.xlane.xlu0 %420 }
 0x663   :  { %3646 = vrcp.f32 %v421_v20 }
 0x664   :  { %3648 = vrcp.f32 %v424_v19 }
 0x666   :  { %v624_v21 = vpop.xlane.xlu1 %623  ;;  %v621_v22 = vpop.xlane.xlu0 %620 }
 0x667   :  { %3650 = vrcp.f32 %v624_v21 }
 0x668   :  { %3652 = vrcp.f32 %v621_v22 }
 0x66a   :  { %v3511_v23 = vpop.permute.xlu1 %3510  ;;  %v3506_v24 = vpop.permute.xlu0 %3505 }
 0x66b   :  { %v3513_v25 = vunpack.i.h.bf16 %v3511_v23  ;;  %v3512_v26 = vunpack.i.l.bf16 %v3511_v23  ;;  %v3508_v27 = vunpack.i.h.bf16 %v3506_v24  ;;  %v3507_v28 = vunpack.i.l.bf16 %v3506_v24 }
 0x66d   :  { %v3647_v32 = vpop.eup %3646  ;;  %v3329_v35 = vpack.c.bf16 %v3508_v27, %v3507_v28  ;;  %v3339_v39 = vpack.c.bf16 %v3513_v25, %v3512_v26 }
 0x66e   :  { %v3649_v36 = vpop.eup %3648  ;;  %v3516_v37 = vpop.permute.xlu1 %3515  ;;  %v427_v38 = vmul.f32 %v3647_v32, %v3641_v13 }
 0x66f   :  { %v3518_v40 = vunpack.i.h.bf16 %v3516_v37  ;;  %v3517_v41 = vunpack.i.l.bf16 %v3516_v37  ;;  %3330 = vmatprep.subr.bf16.mxu1 %v3329_v35  ;;  %v428_v43 = vmul.f32 %v3649_v36, %v3639_v11  ;;  %v717_v0 = vpop.permute.xlu0 %716 }
 0x670   :  { %3332 = vmatpush3.bf16.msra.mxu1 %v3329_v35  ;;  %3117 = vmatprep.mubr.msk.f32.mxu1 %vm34_vm0, %v427_v38 }
 0x671   :  { %v3651_v42 = vpop.eup %3650  ;;  %3340 = vmatprep.subr.bf16.mxu1 %v3339_v39  ;;  %v3343_v46 = vpack.c.bf16 %v3518_v40, %v3517_v41 }
 0x672   :  { %v3653_v45 = vpop.eup %3652  ;;  %v628_v48 = vmul.f32 %v3651_v42, %v3645_v16  ;;  %v719_v1 = vpop.permute.xlu1 %718 }
 0x673   :  { %3118 = vmatmul.mubr.msk.f32.vlgmr.msra.gmra.mrb[0].mxu1 %vm34_vm0, %v428_v43  ;;  %v627_v47 = vmul.f32 %v3653_v45, %v3643_v15  ;;  %v3539_v45 = vpack.i.bf16 %v3881_v34, %v3879_v33 }
 0x674   :  { %3342 = vmatpush3.bf16.msra.mxu1 %v3339_v39 }
 0x675   :  { %3131 = vmatprep.mubr.msk.f32.mxu1 %vm34_vm0, %v627_v47  ;;  %3345 = vmatprep.subr.msk.bf16.mxu1 %vm3920_vm3, %v3343_v46 }
 0x677   :  { %3132 = vmatmul.mubr.msk.f32.vlgmr.msra.gmra.mrb[2].mxu1 %vm34_vm0, %v628_v48 }
 0x678   :  { %3138 = vmatprep.mubr.msk.f32.mxu1 %vm323_vm2, %v717_v0 }
 0x67d   :  { %3348 = vmatpush3.bf16.xpose.msk.msra.mxu1 %vm3920_vm3, %v3343_v46 }
 0x684   :  { %3139 = vmatmul.mubr.msk.f32.vlgmr.msra.gmra.mrb[4].mxu1 %vm323_vm2, %v719_v1 }
 0x746   :  { %v3985_v49 = vpop.f32.mrb[0].mxu1 }
 0x747   :  { %v3987_v51 = vpop.f32.mrb[1].mxu1 }
 0x74a   :  { %v3989_v54 = vpop.f32.mrb[2].mxu1 }
 0x74b   :  { %v3991_v55 = vpop.f32.mrb[3].mxu1 }
 0x757   :  { %v3140_v57 = vpop.f32.mrb[4].mxu1 }
 0x758   :  { %v804_v60 = vadd.f32 %v3140_v57, %v3949_v8  ;;  %v798_v61 = vpop.f32.mrb[5].mxu1 }
 0x759   :  { %v799_v62 = vadd.f32 %v798_v61, %v3951_v44 }
 0x75a   :  { %v810_v63 = vsel %vm34_vm0, %v804_v60, -inf }
 0x75b   :  { %811 = vmax.xlane.f32.xlu1 %v810_v63  ;;  %v807_v3 = vsel %vm34_vm0, %v799_v62, -inf }
 0x75c   :  { %808 = vmax.xlane.f32.xlu0 %v807_v3  ;;  %v3534_v3 = vpack.i.bf16 %v3875_v31, %v3873_v30 }
 0x76c   :  { %3520 = vrot.lane.b32.xlu1 %v3908_v59, %s3786_s14 }
 0x770   :  { %916 = vrot.lane.b32.xlu1 %v3900_v58, %s3787_s15 }
 0x774   :  { %918 = vrot.lane.b32.xlu1 %v3898_v56, %s3787_s15 }
 0x7e8   :  { %v812_v5 = vpop.xlane.xlu1 %811 }
 0x7e9   :  { %v814_v9 = vsub.f32 %v804_v60, %v812_v5  ;;  %v809_v10 = vpop.xlane.xlu0 %808 }
 0x7ea   :  { %v813_v4 = vsub.f32 %v799_v62, %v809_v10 }
 0x7eb   :  { %v817_v11 = vmul.f32 1.442695, %v814_v9 }
 0x7ec   :  { %v815_v12 = vmul.f32 1.442695, %v813_v4  ;;  %v3521_v13 = vpop.permute.xlu1 %3520 }
 0x7ed   :  { %3654 = vpow2.f32 %v817_v11  ;;  %v3523_v14 = vunpack.i.h.bf16 %v3521_v13  ;;  %v3522_v15 = vunpack.i.l.bf16 %v3521_v13 }
 0x7ee   :  { %3656 = vpow2.f32 %v815_v12 }
 0x7ef   :  { %v3349_v16 = vpack.c.bf16 %v3523_v14, %v3522_v15 }
 0x7f0   :  { %v917_v32 = vpop.permute.xlu1 %916 }
 0x7f1   :  { %3350 = vmatprep.subr.bf16.mxu0 %v3349_v16 }
 0x7f2   :  { %3352 = vmatpush3.bf16.msra.mxu0 %v3349_v16 }
 0x7f4   :  { %v919_v35 = vpop.permute.xlu1 %918 }
 0x7f7   :  { %v3655_v17 = vpop.eup %3654 }
 0x7f8   :  { %v822_v58 = vsel %vm34_vm0, %v3655_v17, 0.0  ;;  %v3657_v18 = vpop.eup %3656 }
 0x7f9   :  { %823 = vadd.xlane.f32.xlu0 %v822_v58  ;;  %v819_v56 = vsel %vm34_vm0, %v3657_v18, 0.0 }
 0x7fd   :  { %820 = vadd.xlane.f32.xlu0 %v819_v56 }
 0x813   :  { %3525 = vrot.lane.b32.xlu0 %v3908_v59, %s3788_s16 }
 0x886   :  { %v824_v19 = vpop.xlane.xlu0 %823 }
 0x887   :  { %3658 = vrcp.f32 %v824_v19 }
 0x88a   :  { %v821_v20 = vpop.xlane.xlu0 %820 }
 0x88b   :  { %3660 = vrcp.f32 %v821_v20 }
 0x88e   :  { %v3526_v21 = vpop.permute.xlu0 %3525 }
 0x88f   :  { %v3528_v22 = vunpack.i.h.bf16 %v3526_v21  ;;  %v3527_v23 = vunpack.i.l.bf16 %v3526_v21 }
 0x891   :  { %v3353_v24 = vpack.c.bf16 %v3528_v22, %v3527_v23  ;;  %v3659_v25 = vpop.eup %3658 }
 0x892   :  { %v828_v28 = vmul.f32 %v3659_v25, %v3655_v17 }
 0x893   :  { %3355 = vmatprep.subr.msk.bf16.mxu0 %vm3920_vm3, %v3353_v24 }
 0x895   :  { %v3661_v26 = vpop.eup %3660 }
 0x896   :  { %v827_v27 = vmul.f32 %v3661_v26, %v3657_v18 }
 0x898   :  { %3145 = vmatprep.mubr.msk.f32.mxu0 %vm34_vm0, %v827_v27 }
 0x899   :  { %3146 = vmatmul.mubr.msk.f32.vlgmr.msra.gmra.mrb[8].mxu0 %vm34_vm0, %v828_v28 }
 0x89a   :  { %3358 = vmatpush3.bf16.xpose.msk.msra.mxu0 %vm3920_vm3, %v3353_v24  ;;  %3152 = vmatprep.mubr.msk.f32.mxu0 %vm323_vm2, %v917_v32 }
 0x8a1   :  { %3153 = vmatmul.mubr.msk.f32.vlgmr.msra.gmra.mrb[10].mxu0 %vm323_vm2, %v919_v35 }
 0x96c   :  { %v3147_v36 = vpop.f32.mrb[8].mxu0 }
 0x96d   :  { %v907_v37 = vpop.f32.mrb[9].mxu0 }
 0x974   :  { %v3154_v38 = vpop.f32.mrb[10].mxu0 }
 0x975   :  { %v1004_v39 = vadd.f32 %v3154_v38, %v3949_v8  ;;  %v998_v40 = vpop.f32.mrb[11].mxu0 }
 0x976   :  { %v999_v41 = vadd.f32 %v998_v40, %v3951_v44 }
 0x977   :  { %v1010_v42 = vsel %vm34_vm0, %v1004_v39, -inf }
 0x978   :  { %1011 = vmax.xlane.f32.xlu1 %v1010_v42  ;;  %v1007_v43 = vsel %vm34_vm0, %v999_v41, -inf }
 0x979   :  { %1008 = vmax.xlane.f32.xlu0 %v1007_v43 }
 0x989   :  { %3530 = vrot.lane.b32.xlu1 %v3908_v59, %s3789_s17 }
 0x98d   :  { %3540 = vrot.lane.b32.xlu1 %v3539_v45, %s3783_s11 }
 0x991   :  { %1118 = vrot.lane.b32.xlu1 %v3991_v55, %s3776_s23 }
 0x995   :  { %1126 = vrot.lane.b32.xlu1 %v907_v37, %s3790_s18 }
 0xa05   :  { %v1012_v46 = vpop.xlane.xlu1 %1011 }
 0xa06   :  { %v1014_v47 = vsub.f32 %v1004_v39, %v1012_v46  ;;  %v1009_v48 = vpop.xlane.xlu0 %1008 }
 0xa07   :  { %v1013_v0 = vsub.f32 %v999_v41, %v1009_v48 }
 0xa08   :  { %v1017_v1 = vmul.f32 1.442695, %v1014_v47 }
 0xa09   :  { %v1015_v57 = vmul.f32 1.442695, %v1013_v0  ;;  %v3531_v60 = vpop.permute.xlu1 %3530 }
 0xa0a   :  { %v3533_v61 = vunpack.i.h.bf16 %v3531_v60  ;;  %v3532_v59 = vunpack.i.l.bf16 %v3531_v60  ;;  %v216_v60 = vld [vmem:[#allocation2 + $0x28] sm:$0xff] }
 0xa0b   :  { %3662 = vpow2.f32 %v1015_v57 }
 0xa0c   :  { %v3359_v62 = vpack.c.bf16 %v3533_v61, %v3532_v59  ;;  %3664 = vpow2.f32 %v1017_v1  ;;  %v217_v59 = vld [vmem:[#allocation2 + $0x30] sm:$0xff] }
 0xa0d   :  { %v3541_v13 = vpop.permute.xlu1 %3540 }
 0xa0e   :  { %3360 = vmatprep.subr.bf16.mxu1 %v3359_v62  ;;  %v3543_v15 = vunpack.i.h.bf16 %v3541_v13  ;;  %v3542_v16 = vunpack.i.l.bf16 %v3541_v13 }
 0xa0f   :  { %3362 = vmatpush3.bf16.msra.mxu1 %v3359_v62  ;;  %v218_v62 = vld [vmem:[#allocation2 + $0x38] sm:$0xff] }
 0xa11   :  { %v1119_v19 = vpop.permute.xlu1 %1118 }
 0xa12   :  { %v1140_v22 = vsel %vm323_vm2, %v3987_v51, %v1119_v19  ;;  %v1150_v51 = vrot.slane %v3894_v53, %v3940_v29 }
 0xa15   :  { %v3663_v33 = vpop.eup %3662  ;;  %v1127_v21 = vpop.permute.xlu1 %1126 }
 0xa16   :  { %v1019_v34 = vsel %vm34_vm0, %v3663_v33, 0.0  ;;  %v3665_v55 = vpop.eup %3664  ;;  %v1142_v24 = vsel %vm34_vm0, %v1140_v22, %v1127_v21 }
 0xa17   :  { %1020 = vadd.xlane.f32.xlu0 %v1019_v34  ;;  %v1022_v63 = vsel %vm34_vm0, %v3665_v55, 0.0 }
 0xa1b   :  { %1023 = vadd.xlane.f32.xlu0 %v1022_v63  ;;  %v219_v63 = vld [vmem:[#allocation2 + $0x40] sm:$0xff] }
 0xa31   :  { %3535 = vrot.lane.b32.xlu0 %v3534_v3, %s3783_s11  ;;  %v220_v3 = vld [vmem:[#allocation2 + $0x48] sm:$0xff] }
 0xa35   :  { %1120 = vrot.lane.b32.xlu0 %v3989_v54, %s3776_s23  ;;  %v3367_v54 = vpack.c.bf16 %v3543_v15, %v3542_v16 }
 0xa39   :  { %1128 = vrot.lane.b32.xlu0 %v3147_v36, %s3790_s18 }
 0xaa4   :  { %v1021_v5 = vpop.xlane.xlu0 %1020 }
 0xaa5   :  { %3666 = vrcp.f32 %v1021_v5  ;;  %v221_v5 = vld [vmem:[#allocation2 + $0x50] sm:$0xff] }
 0xaa8   :  { %v1024_v9 = vpop.xlane.xlu0 %1023 }
 0xaa9   :  { %3668 = vrcp.f32 %v1024_v9  ;;  %v222_v9 = vld [vmem:[#allocation2 + $0x58] sm:$0xff] }
 0xaac   :  { %v3536_v10 = vpop.permute.xlu0 %3535 }
 0xaad   :  { %v3538_v4 = vunpack.i.h.bf16 %v3536_v10  ;;  %v3537_v11 = vunpack.i.l.bf16 %v3536_v10  ;;  %v3554_v10 = vpack.i.bf16 %v220_v3, %v219_v63 }
 0xaaf   :  { %v3667_v12 = vpop.eup %3666  ;;  %v3363_v14 = vpack.c.bf16 %v3538_v4, %v3537_v11  ;;  %v3559_v4 = vpack.i.bf16 %v222_v9, %v221_v5  ;;  %v1289_v11 = vsub.s32 2, %v3855_v6 }
 0xab0   :  { %v1027_v30 = vmul.f32 %v3667_v12, %v3663_v33  ;;  %v1121_v56 = vpop.permute.xlu0 %1120  ;;  %v3375_v33 = vpack.c.bf16 %v218_v62, %v217_v59 }
 0xab1   :  { %3364 = vmatprep.subr.bf16.mxu1 %v3363_v14  ;;  %v1141_v25 = vsel %vm323_vm2, %v3985_v49, %v1121_v56  ;;  %v1290_v12 = vrot.slane %v3894_v53, %v1289_v11 }
 0xab2   :  { %3159 = vmatprep.mubr.msk.f32.mxu1 %vm34_vm0, %v1027_v30 }
 0xab3   :  { %v3669_v31 = vpop.eup %3668 }
 0xab4   :  { %v1028_v17 = vmul.f32 %v3669_v31, %v3665_v55  ;;  %v1129_v20 = vpop.permute.xlu0 %1128  ;;  %v3549_v55 = vpack.i.bf16 %v218_v62, %v217_v59 }
 0xab5   :  { %v1143_v27 = vsel %vm34_vm0, %v1141_v25, %v1129_v20 }
 0xab6   :  { %3160 = vmatmul.mubr.msk.f32.vlgmr.msra.gmra.mrb[6].mxu1 %vm34_vm0, %v1028_v17 }
 0xab7   :  { %3366 = vmatpush3.bf16.msra.mxu1 %v3363_v14 }
 0xab8   :  { %3368 = vmatprep.subr.bf16.mxu1 %v3367_v54 }
 0xabb   :  { %3370 = vmatpush3.bf16.msra.mxu1 %v3367_v54 }
 0xb89   :  { %v3161_v58 = vpop.f32.mrb[6].mxu1 }
 0xb8a   :  { %1136 = vrot.lane.b32.xlu0 %v3161_v58, %s3791_s19  ;;  %v1107_v18 = vpop.f32.mrb[7].mxu1 }
 0xb8b   :  { %1134 = vrot.lane.b32.xlu1 %v1107_v18, %s3791_s19 }
 0xbfc   :  { %v1137_v23 = vpop.permute.xlu0 %1136 }
 0xbfd   :  { %v1135_v26 = vpop.permute.xlu1 %1134  ;;  %v1146_v32 = vsel %vm1144_vm10, %v1143_v27, %v1137_v23 }
 0xbfe   :  { %v1145_v28 = vsel %vm1144_vm10, %v1142_v24, %v1135_v26 }
 0xbff   :  { %3170 = vmatprep.mubr.msk.f32.mxu1 %vm172_vm1, %v1145_v28 }
 0xc00   :  { %3171 = vmatmul.mubr.msk.f32.vlgmr.msra.gmra.mrb[8].mxu1 %vm172_vm1, %v1146_v32 }
 0xcd3   :  { %v3172_v35 = vpop.f32.mrb[8].mxu1 }
 0xcd4   :  { %v1245_v36 = vadd.f32 %v3172_v35, %v1150_v51  ;;  %v1239_v37 = vpop.f32.mrb[9].mxu1 }
 0xcd5   :  { %v1240_v38 = vadd.f32 %v1239_v37, %v1150_v51 }
 0xcd6   :  { %v1249_v49 = vadd.f32 %v1245_v36, %v3890_v52 }
 0xcd7   :  { %v1248_v39 = vadd.f32 %v1240_v38, %v3886_v50  ;;  %v215_v50 = vld [vmem:[#allocation2 + $0x20] sm:$0xff] }
 0xcd8   :  { %v1253_v40 = vsel %vm172_vm1, %v1249_v49, 0.0  ;;  %v3371_v61 = vpack.c.bf16 %v216_v60, %v215_v50  ;;  %v3544_v34 = vpack.i.bf16 %v216_v60, %v215_v50 }
 0xcd9   :  { %1254 = vadd.xlane.f32.xlu0 %v1253_v40  ;;  %v1250_v41 = vsel %vm172_vm1, %v1248_v39, 0.0 }
 0xcda   :  { %1251 = vadd.xlane.f32.xlu1 %v1250_v41  ;;  %3372 = vmatprep.subr.bf16.mxu0 %v3371_v61 }
 0xcdb   :  { %3374 = vmatpush3.bf16.msra.mxu0 %v3371_v61 }
 0xcdc   :  { %3376 = vmatprep.subr.bf16.mxu0 %v3375_v33 }
 0xcdf   :  { %3378 = vmatpush3.bf16.msra.mxu0 %v3375_v33 }
 0xd66   :  { %v1255_v42 = vpop.xlane.xlu0 %1254 }
 0xd67   :  { %v1257_v43 = vmul.f32 0.03125, %v1255_v42  ;;  %v1252_v45 = vpop.xlane.xlu1 %1251 }
 0xd68   :  { %v1256_v46 = vmul.f32 0.03125, %v1252_v45 }
 0xd69   :  { %v1259_v47 = vsub.f32 %v1249_v49, %v1257_v43 }
 0xd6a   :  { %v1258_v48 = vsub.f32 %v1248_v39, %v1256_v46 }
 0xd6b   :  { %v1261_v0 = vmul.f32 %v1259_v47, %v1259_v47 }
 0xd6c   :  { %v1260_v1 = vmul.f32 %v1258_v48, %v1258_v48 }
 0xd6d   :  { %v1265_v57 = vsel %vm172_vm1, %v1261_v0, 0.0 }
 0xd6e   :  { %1266 = vadd.xlane.f32.xlu1 %v1265_v57  ;;  %v1262_v52 = vsel %vm172_vm1, %v1260_v1, 0.0 }
 0xd6f   :  { %1263 = vadd.xlane.f32.xlu0 %v1262_v52 }
 0xd7f   :  { %1282 = vrot.lane.b32.xlu1 %v1150_v51, %s3779_s1 }
 0xd83   :  { %3545 = vrot.lane.b32.xlu1 %v3544_v34, %s3779_s1 }
 0xd85   :  { %1277 = vrot.lane.b32.xlu0 %v1150_v51, %s3778_s0 }
 0xd87   :  { %3555 = vrot.lane.b32.xlu1 %v3554_v10, %s3779_s1 }
 0xd89   :  { %3550 = vrot.lane.b32.xlu0 %v3549_v55, %s3779_s1 }
 0xd8b   :  { %1423 = vrot.lane.b32.xlu1 %v1290_v12, %s3779_s1 }
 0xd8d   :  { %3560 = vrot.lane.b32.xlu0 %v3559_v4, %s3779_s1 }
 0xdfb   :  { %v1267_v13 = vpop.xlane.xlu1 %1266 }
 0xdfc   :  { %v1269_v14 = vmul.f32 0.03125, %v1267_v13  ;;  %v1264_v15 = vpop.xlane.xlu0 %1263 }
 0xdfd   :  { %v1268_v16 = vmul.f32 0.03125, %v1264_v15 }
 0xdfe   :  { %v1271_v30 = vadd.f32 1e-12, %v1269_v14 }
 0xdff   :  { %v1270_v31 = vadd.f32 1e-12, %v1268_v16  ;;  %v1283_v20 = vpop.permute.xlu1 %1282 }
 0xe00   :  { %3670 = vrsqrt.f32 %v1271_v30  ;;  %v1278_v17 = vpop.permute.xlu0 %1277 }
 0xe01   :  { %3672 = vrsqrt.f32 %v1270_v31 }
 0xe03   :  { %v3546_v24 = vpop.permute.xlu1 %3545 }
 0xe04   :  { %v3548_v25 = vunpack.i.h.bf16 %v3546_v24  ;;  %v3547_v26 = vunpack.i.l.bf16 %v3546_v24  ;;  %v3551_v28 = vpop.permute.xlu0 %3550 }
 0xe05   :  { %v3553_v51 = vunpack.i.h.bf16 %v3551_v28  ;;  %v3552_v35 = vunpack.i.l.bf16 %v3551_v28  ;;  %v4083_v28 = vld [vmem:[#allocation2 + $0x70] sm:$0xff] }
 0xe06   :  { %v3379_v27 = vpack.c.bf16 %v3548_v25, %v3547_v26 }
 0xe07   :  { %v3556_v32 = vpop.permute.xlu1 %3555  ;;  %v3383_v38 = vpack.c.bf16 %v3553_v51, %v3552_v35  ;;  %v4089_v51 = vld [vmem:[#allocation2 + $0x78] sm:$0xff]  ;;  %v4091_v35 = vld [vmem:[#allocation2 + $0x80] sm:$0xff] }
 0xe08   :  { %3380 = vmatprep.subr.bf16.mxu1 %v3379_v27  ;;  %v3558_v36 = vunpack.i.h.bf16 %v3556_v32  ;;  %v3557_v37 = vunpack.i.l.bf16 %v3556_v32  ;;  %v3561_v39 = vpop.permute.xlu0 %3560  ;;  %v3609_v2 = vpack.i.bf16 %v4091_v35, %v4089_v51 }
 0xe09   :  { %3382 = vmatpush3.bf16.msra.mxu1 %v3379_v27  ;;  %v3563_v40 = vunpack.i.h.bf16 %v3561_v39  ;;  %v3562_v41 = vunpack.i.l.bf16 %v3561_v39  ;;  %v4081_v27 = vld [vmem:[#allocation2 + $0x68] sm:$0xff] }
 0xe0a   :  { %v3671_v54 = vpop.eup %3670  ;;  %v3387_v49 = vpack.c.bf16 %v3558_v36, %v3557_v37  ;;  %3384 = vmatprep.subr.bf16.mxu1 %v3383_v38  ;;  %v3395_v32 = vpack.c.bf16 %v4083_v28, %v4081_v27  ;;  %v3399_v36 = vpack.c.bf16 %v4091_v35, %v4089_v51 }
 0xe0b   :  { %v3673_v58 = vpop.eup %3672  ;;  %v1275_v18 = vmul.f32 %v3671_v54, %v1259_v47  ;;  %v3391_v42 = vpack.c.bf16 %v3563_v40, %v3562_v41  ;;  %v1424_v4 = vpop.permute.xlu1 %1423 }
 0xe0c   :  { %v1274_v56 = vmul.f32 %v3673_v58, %v1258_v48  ;;  %3396 = vmatprep.subr.bf16.mxu0 %v3395_v32 }
 0xe0d   :  { %v1281_v19 = vmul.f32 %v1278_v17, %v1275_v18  ;;  %3386 = vmatpush3.bf16.msra.mxu1 %v3383_v38 }
 0xe0e   :  { %v1280_v21 = vmul.f32 %v1278_v17, %v1274_v56  ;;  %3388 = vmatprep.subr.bf16.mxu1 %v3387_v49  ;;  %v1538_v17 = vsub.s32 3, %v3855_v6 }
 0xe0f   :  { %v1286_v23 = vadd.f32 %v1283_v20, %v1281_v19 }
 0xe10   :  { %v1285_v22 = vadd.f32 %v1283_v20, %v1280_v21  ;;  %v1539_v58 = vrot.slane %v3894_v53, %v1538_v17  ;;  %v3604_v53 = vpack.i.bf16 %v4083_v28, %v4081_v27 }
 0xe11   :  { %3390 = vmatpush3.bf16.msra.mxu1 %v3387_v49 }
 0xe12   :  { %3181 = vmatprep.mubr.msk.f32.mxu0 %vm172_vm1, %v1285_v22  ;;  %3392 = vmatprep.subr.bf16.mxu1 %v3391_v42 }
 0xe13   :  { %3182 = vmatmul.mubr.msk.f32.vlgmr.msra.gmra.mrb[12].mxu0 %vm172_vm1, %v1286_v23 }
 0xe14   :  { %3398 = vmatpush3.bf16.msra.mxu0 %v3395_v32 }
 0xe15   :  { %3394 = vmatpush3.bf16.msra.mxu1 %v3391_v42  ;;  %3400 = vmatprep.subr.bf16.mxu0 %v3399_v36 }
 0xe18   :  { %3402 = vmatpush3.bf16.msra.mxu0 %v3399_v36 }
 0xee6   :  { %v3183_v43 = vpop.f32.mrb[12].mxu0 }
 0xee7   :  { %v1369_v45 = vadd.f32 %v3183_v43, %v1290_v12  ;;  %v1363_v46 = vpop.f32.mrb[13].mxu0 }
 0xee8   :  { %v1364_v47 = vadd.f32 %v1363_v46, %v1290_v12 }
 0xee9   :  { %v1375_v48 = vmul.f32 0.044715, %v1369_v45  ;;  %v1373_v5 = vmul.f32 0.5, %v1369_v45 }
 0xeea   :  { %v1374_v0 = vmul.f32 0.044715, %v1364_v47  ;;  %v1372_v63 = vmul.f32 0.5, %v1364_v47 }
 0xeeb   :  { %v1377_v1 = vmul.f32 %v1375_v48, %v1369_v45 }
 0xeec   :  { %v1376_v57 = vmul.f32 %v1374_v0, %v1364_v47 }
 0xeed   :  { %v1379_v52 = vmul.f32 %v1377_v1, %v1369_v45 }
 0xeee   :  { %v1378_v50 = vmul.f32 %v1376_v57, %v1364_v47 }
 0xeef   :  { %v1381_v60 = vadd.f32 %v1379_v52, %v1369_v45  ;;  %v4103_v52 = vld [vmem:[#allocation2 + $0xc8] sm:$0xff] }
 0xef0   :  { %v1380_v61 = vadd.f32 %v1378_v50, %v1364_v47  ;;  %v1565_v50 = vrot.slane %v4103_v52, %v3858_v7 }
 0xef1   :  { %v1383_v59 = vmul.f32 0.7978846, %v1381_v60 }
 0xef2   :  { %v1382_v62 = vmul.f32 0.7978846, %v1380_v61 }
 0xef3   :  { %3674 = vtanh.f32 %v1383_v59 }
 0xef4   :  { %3676 = vtanh.f32 %v1382_v62 }
 0xefd   :  { %v3675_v33 = vpop.eup %3674 }
 0xefe   :  { %v3677_v34 = vpop.eup %3676  ;;  %v1387_v55 = vadd.f32 1.0, %v3675_v33 }
 0xeff   :  { %v1386_v3 = vadd.f32 1.0, %v3677_v34 }
 0xf00   :  { %v1389_v10 = vmul.f32 %v1387_v55, %v1373_v5 }
 0xf01   :  { %v1388_v9 = vmul.f32 %v1386_v3, %v1372_v63 }
 0xf03   :  { %3200 = vmatprep.mubr.msk.f32.mxu1 %vm1426_vm11, %v1388_v9 }
 0xf04   :  { %3201 = vmatmul.mubr.msk.f32.vlgmr.msra.gmra.mrb[10].mxu1 %vm1426_vm11, %v1389_v10 }
 0xfd7   :  { %v3202_v12 = vpop.f32.mrb[10].mxu1 }
 0xfd8   :  { %v1505_v13 = vadd.f32 %v3202_v12, %v1424_v4  ;;  %v1499_v14 = vpop.f32.mrb[11].mxu1 }
 0xfd9   :  { %v1500_v15 = vadd.f32 %v1499_v14, %v1424_v4 }
 0xfda   :  { %v1509_v16 = vadd.f32 %v1505_v13, %v1286_v23 }
 0xfdb   :  { %v1508_v30 = vadd.f32 %v1500_v15, %v1285_v22 }
 0xfdc   :  { %v1513_v31 = vsel %vm172_vm1, %v1509_v16, 0.0 }
 0xfdd   :  { %1514 = vadd.xlane.f32.xlu1 %v1513_v31  ;;  %v1510_v54 = vsel %vm172_vm1, %v1508_v30, 0.0 }
 0xfde   :  { %1511 = vadd.xlane.f32.xlu0 %v1510_v54 }
 0xfee   :  { %1543 = vrot.lane.b32.xlu1 %v1539_v58, %s3778_s0 }
0x106a   :  { %v1515_v18 = vpop.xlane.xlu1 %1514 }
0x106b   :  { %v1517_v56 = vmul.f32 0.03125, %v1515_v18  ;;  %v1512_v19 = vpop.xlane.xlu0 %1511 }
0x106c   :  { %v1516_v20 = vmul.f32 0.03125, %v1512_v19 }
0x106d   :  { %v1519_v21 = vsub.f32 %v1509_v16, %v1517_v56 }
0x106e   :  { %v1518_v22 = vsub.f32 %v1508_v30, %v1516_v20  ;;  %v1544_v45 = vpop.permute.xlu1 %1543 }
0x106f   :  { %v1521_v25 = vmul.f32 %v1519_v21, %v1519_v21 }
0x1070   :  { %v1520_v23 = vmul.f32 %v1518_v22, %v1518_v22 }
0x1071   :  { %v1525_v26 = vsel %vm172_vm1, %v1521_v25, 0.0 }
0x1072   :  { %v1522_v24 = vsel %vm172_vm1, %v1520_v23, 0.0 }
0x1073   :  { %1523 = vadd.xlane.f32.xlu0 %v1522_v24 }
0x1077   :  { %1526 = vadd.xlane.f32.xlu0 %v1525_v26 }
0x1100   :  { %v1524_v37 = vpop.xlane.xlu0 %1523 }
0x1101   :  { %v1528_v38 = vmul.f32 0.03125, %v1524_v37 }
0x1103   :  { %v1530_v49 = vadd.f32 1e-12, %v1528_v38 }
0x1104   :  { %v1527_v39 = vpop.xlane.xlu0 %1526 }
0x1105   :  { %3678 = vrsqrt.f32 %v1530_v49  ;;  %v1529_v40 = vmul.f32 0.03125, %v1527_v39 }
0x1107   :  { %v1531_v41 = vadd.f32 1e-12, %v1529_v40 }
0x1109   :  { %3680 = vrsqrt.f32 %v1531_v41 }
0x110f   :  { %v3679_v42 = vpop.eup %3678 }
0x1110   :  { %v1534_v43 = vmul.f32 %v3679_v42, %v1518_v22 }
0x1112   :  { %v1540_v46 = vmul.f32 %v1539_v58, %v1534_v43 }
0x1113   :  { %v3681_v47 = vpop.eup %3680 }
0x1114   :  { %v1535_v48 = vmul.f32 %v3681_v47, %v1519_v21  ;;  %v4095_v0 = vadd.f32 %v1544_v45, %v1540_v46 }
0x1116   :  { %v1541_v1 = vmul.f32 %v1539_v58, %v1535_v48  ;;  %3211 = vmatprep.mubr.msk.f32.mxu0 %vm172_vm1, %v4095_v0 }
0x1118   :  { %v4099_v57 = vadd.f32 %v1544_v45, %v1541_v1 }
0x111a   :  { %3212 = vmatmul.mubr.msk.f32.vlgmr.msra.gmra.mrb[14].mxu0 %vm172_vm1, %v4099_v57 }
0x11ed   :  { %v3213_v60 = vpop.f32.mrb[14].mxu0 }
0x11ee   :  { %v4107_v61 = vadd.f32 %v3213_v60, %v1565_v50  ;;  %v1638_v59 = vpop.f32.mrb[15].mxu0 }
0x11ef   :  { %v4109_v62 = vadd.f32 %v1638_v59, %v1565_v50 }
0x11f1   :  { %3218 = vmatprep.mubr.msk.f32.mxu0 %vm323_vm2, %v4109_v62  ;;  %v4115_v33 = vpack.i.bf16 %v4107_v61, %v4109_v62 }
0x11f3   :  { %3570 = vrot.lane.b32.xlu1 %v4115_v33, %s3781_s10  ;;  %3565 = vrot.lane.b32.xlu0 %v4115_v33, %s3778_s0 }
0x11f7   :  { %1845 = vrot.lane.b32.xlu1 %v4109_v62, %s3780_s9  ;;  %1847 = vrot.lane.b32.xlu0 %v4107_v61, %s3780_s9 }
0x1265   :  { %v3571_v7 = vpop.permute.xlu1 %3570  ;;  %v3566_v34 = vpop.permute.xlu0 %3565 }
0x1266   :  { %v3573_v55 = vunpack.i.h.bf16 %v3571_v7  ;;  %v3572_v63 = vunpack.i.l.bf16 %v3571_v7  ;;  %v3568_v3 = vunpack.i.h.bf16 %v3566_v34  ;;  %v3567_v5 = vunpack.i.l.bf16 %v3566_v34 }
0x1268   :  { %v3403_v9 = vpack.c.bf16 %v3568_v3, %v3567_v5  ;;  %v3413_v10 = vpack.c.bf16 %v3573_v55, %v3572_v63 }
0x1269   :  { %v1846_v4 = vpop.permute.xlu1 %1845  ;;  %v1848_v12 = vpop.permute.xlu0 %1847 }
0x126a   :  { %3405 = vmatprep.subr.msk.bf16.mxu0 %vm3920_vm3, %v3403_v9 }
0x126b   :  { %3408 = vmatpush3.bf16.xpose.msk.msra.mxu0 %vm3920_vm3, %v3403_v9 }
0x126c   :  { %3415 = vmatprep.subr.msk.bf16.mxu0 %vm3920_vm3, %v3413_v10 }
0x1272   :  { %3219 = vmatmul.mubr.msk.f32.vlgmr.msra.gmra.mrb[16].mxu0 %vm323_vm2, %v4107_v61 }
0x1273   :  { %3418 = vmatpush3.bf16.xpose.msk.msra.mxu0 %vm3920_vm3, %v3413_v10  ;;  %3232 = vmatprep.mubr.msk.f32.mxu0 %vm323_vm2, %v1846_v4 }
0x127a   :  { %3233 = vmatmul.mubr.msk.f32.vlgmr.msra.gmra.mrb[18].mxu0 %vm323_vm2, %v1848_v12 }
0x1345   :  { %v3220_v13 = vpop.f32.mrb[16].mxu0 }
0x1346   :  { %v1733_v14 = vadd.f32 %v3220_v13, %v3949_v8  ;;  %v1727_v15 = vpop.f32.mrb[17].mxu0 }
0x1347   :  { %v1728_v16 = vadd.f32 %v1727_v15, %v3951_v44 }
0x1348   :  { %v1739_v30 = vsel %vm34_vm0, %v1733_v14, -inf }
0x1349   :  { %1740 = vmax.xlane.f32.xlu0 %v1739_v30  ;;  %v1736_v31 = vsel %vm34_vm0, %v1728_v16, -inf }
0x134a   :  { %1737 = vmax.xlane.f32.xlu1 %v1736_v31 }
0x134d   :  { %v3234_v54 = vpop.f32.mrb[18].mxu0 }
0x134e   :  { %v1933_v58 = vadd.f32 %v3234_v54, %v3949_v8  ;;  %v1927_v18 = vpop.f32.mrb[19].mxu0 }
0x134f   :  { %v1928_v56 = vadd.f32 %v1927_v18, %v3951_v44 }
0x1350   :  { %v1939_v19 = vsel %vm34_vm0, %v1933_v58, -inf }
0x1351   :  { %1940 = vmax.xlane.f32.xlu1 %v1939_v19  ;;  %v1936_v20 = vsel %vm34_vm0, %v1928_v56, -inf }
0x1352   :  { %1937 = vmax.xlane.f32.xlu0 %v1936_v20 }
0x13d6   :  { %v1741_v21 = vpop.xlane.xlu0 %1740 }
0x13d7   :  { %v1743_v22 = vsub.f32 %v1733_v14, %v1741_v21  ;;  %v1738_v23 = vpop.xlane.xlu1 %1737 }
0x13d8   :  { %v1742_v24 = vsub.f32 %v1728_v16, %v1738_v23 }
0x13d9   :  { %v1746_v25 = vmul.f32 1.442695, %v1743_v22 }
0x13da   :  { %v1744_v26 = vmul.f32 1.442695, %v1742_v24 }
0x13db   :  { %3682 = vpow2.f32 %v1746_v25 }
0x13dc   :  { %3684 = vpow2.f32 %v1744_v26 }
0x13de   :  { %v1941_v32 = vpop.xlane.xlu1 %1940 }
0x13df   :  { %v1943_v36 = vsub.f32 %v1933_v58, %v1941_v32  ;;  %v1938_v37 = vpop.xlane.xlu0 %1937 }
0x13e0   :  { %v1942_v38 = vsub.f32 %v1928_v56, %v1938_v37 }
0x13e1   :  { %v1946_v49 = vmul.f32 1.442695, %v1943_v36 }
0x13e2   :  { %v1944_v39 = vmul.f32 1.442695, %v1942_v38 }
0x13e3   :  { %3686 = vpow2.f32 %v1946_v49 }
0x13e4   :  { %3688 = vpow2.f32 %v1944_v39 }
0x13e5   :  { %v3683_v40 = vpop.eup %3682 }
0x13e6   :  { %v3685_v41 = vpop.eup %3684  ;;  %v1751_v42 = vsel %vm34_vm0, %v3683_v40, 0.0 }
0x13e7   :  { %1752 = vadd.xlane.f32.xlu1 %v1751_v42  ;;  %v1748_v43 = vsel %vm34_vm0, %v3685_v41, 0.0 }
0x13e8   :  { %1749 = vadd.xlane.f32.xlu0 %v1748_v43 }
0x13ed   :  { %v3687_v45 = vpop.eup %3686 }
0x13ee   :  { %v3689_v46 = vpop.eup %3688  ;;  %v1951_v47 = vsel %vm34_vm0, %v3687_v45, 0.0 }
0x13ef   :  { %1952 = vadd.xlane.f32.xlu1 %v1951_v47  ;;  %v1948_v48 = vsel %vm34_vm0, %v3689_v46, 0.0 }
0x13f0   :  { %1949 = vadd.xlane.f32.xlu0 %v1948_v48 }
0x1400   :  { %3580 = vrot.lane.b32.xlu1 %v4115_v33, %s3784_s12 }
0x1404   :  { %3585 = vrot.lane.b32.xlu1 %v4115_v33, %s3777_s2 }
0x1406   :  { %3575 = vrot.lane.b32.xlu0 %v4115_v33, %s3779_s1 }
0x1408   :  { %2047 = vrot.lane.b32.xlu1 %v4107_v61, %s3785_s13 }
0x140a   :  { %2045 = vrot.lane.b32.xlu0 %v4109_v62, %s3785_s13 }
0x1474   :  { %v1753_v50 = vpop.xlane.xlu1 %1752 }
0x1475   :  { %v1750_v1 = vpop.xlane.xlu0 %1749 }
0x1476   :  { %3690 = vrcp.f32 %v1750_v1 }
0x1477   :  { %3692 = vrcp.f32 %v1753_v50 }
0x147c   :  { %v1953_v60 = vpop.xlane.xlu1 %1952 }
0x147d   :  { %v1950_v59 = vpop.xlane.xlu0 %1949 }
0x147e   :  { %3694 = vrcp.f32 %v1950_v59 }
0x147f   :  { %3696 = vrcp.f32 %v1953_v60 }
0x1480   :  { %v3691_v7 = vpop.eup %3690  ;;  %v3581_v34 = vpop.permute.xlu1 %3580 }
0x1481   :  { %v3576_v55 = vpop.permute.xlu0 %3575  ;;  %v1756_v63 = vmul.f32 %v3691_v7, %v3685_v41  ;;  %v3583_v3 = vunpack.i.h.bf16 %v3581_v34  ;;  %v3582_v5 = vunpack.i.l.bf16 %v3581_v34  ;;  %v3693_v13 = vpop.eup %3692 }
0x1482   :  { %v3578_v9 = vunpack.i.h.bf16 %v3576_v55  ;;  %v3577_v10 = vunpack.i.l.bf16 %v3576_v55  ;;  %v1757_v31 = vmul.f32 %v3693_v13, %v3683_v40 }
0x1483   :  { %3225 = vmatprep.mubr.msk.f32.mxu1 %vm34_vm0, %v1756_v63  ;;  %v3419_v14 = vpack.c.bf16 %v3583_v3, %v3582_v5 }
0x1484   :  { %v3409_v4 = vpack.c.bf16 %v3578_v9, %v3577_v10  ;;  %v3586_v12 = vpop.permute.xlu1 %3585 }
0x1485   :  { %v3588_v15 = vunpack.i.h.bf16 %v3586_v12  ;;  %v3587_v16 = vunpack.i.l.bf16 %v3586_v12  ;;  %v2046_v19 = vpop.permute.xlu0 %2045 }
0x1486   :  { %3410 = vmatprep.subr.bf16.mxu1 %v3409_v4 }
0x1487   :  { %3412 = vmatpush3.bf16.msra.mxu1 %v3409_v4  ;;  %v3423_v18 = vpack.c.bf16 %v3588_v15, %v3587_v16 }
0x1488   :  { %v3695_v30 = vpop.eup %3694  ;;  %3420 = vmatprep.subr.bf16.mxu1 %v3419_v14  ;;  %v2048_v20 = vpop.permute.xlu1 %2047 }
0x1489   :  { %v3697_v54 = vpop.eup %3696  ;;  %v1956_v58 = vmul.f32 %v3695_v30, %v3689_v46 }
0x148a   :  { %3226 = vmatmul.mubr.msk.f32.vlgmr.msra.gmra.mrb[12].mxu1 %vm34_vm0, %v1757_v31  ;;  %v1957_v56 = vmul.f32 %v3697_v54, %v3687_v45 }
0x148b   :  { %3422 = vmatpush3.bf16.msra.mxu1 %v3419_v14  ;;  %3239 = vmatprep.mubr.msk.f32.mxu1 %vm34_vm0, %v1956_v58 }
0x148c   :  { %3425 = vmatprep.subr.msk.bf16.mxu1 %vm3920_vm3, %v3423_v18 }
0x148e   :  { %3240 = vmatmul.mubr.msk.f32.vlgmr.msra.gmra.mrb[14].mxu1 %vm34_vm0, %v1957_v56 }
0x148f   :  { %3246 = vmatprep.mubr.msk.f32.mxu1 %vm323_vm2, %v2046_v19 }
0x1494   :  { %3428 = vmatpush3.bf16.xpose.msk.msra.mxu1 %vm3920_vm3, %v3423_v18 }
0x149b   :  { %3247 = vmatmul.mubr.msk.f32.vlgmr.msra.gmra.mrb[16].mxu1 %vm323_vm2, %v2048_v20 }
0x155d   :  { %v4169_v21 = vpop.f32.mrb[12].mxu1 }
0x155e   :  { %v4171_v22 = vpop.f32.mrb[13].mxu1 }
0x1561   :  { %v4173_v23 = vpop.f32.mrb[14].mxu1 }
0x1562   :  { %v4175_v24 = vpop.f32.mrb[15].mxu1 }
0x156e   :  { %v3248_v25 = vpop.f32.mrb[16].mxu1 }
0x156f   :  { %v2133_v26 = vadd.f32 %v3248_v25, %v3949_v8  ;;  %v2127_v32 = vpop.f32.mrb[17].mxu1 }
0x1570   :  { %v2128_v36 = vadd.f32 %v2127_v32, %v3951_v44 }
0x1571   :  { %v2139_v37 = vsel %vm34_vm0, %v2133_v26, -inf }
0x1572   :  { %2140 = vmax.xlane.f32.xlu1 %v2139_v37  ;;  %v2136_v38 = vsel %vm34_vm0, %v2128_v36, -inf }
0x1573   :  { %2137 = vmax.xlane.f32.xlu0 %v2136_v38 }
0x1583   :  { %3590 = vrot.lane.b32.xlu1 %v4115_v33, %s3786_s14 }
0x1587   :  { %2245 = vrot.lane.b32.xlu1 %v4109_v62, %s3787_s15 }
0x158b   :  { %2247 = vrot.lane.b32.xlu1 %v4107_v61, %s3787_s15 }
0x15ff   :  { %v2141_v49 = vpop.xlane.xlu1 %2140 }
0x1600   :  { %v2143_v39 = vsub.f32 %v2133_v26, %v2141_v49  ;;  %v2138_v40 = vpop.xlane.xlu0 %2137 }
0x1601   :  { %v2142_v41 = vsub.f32 %v2128_v36, %v2138_v40 }
0x1602   :  { %v2146_v42 = vmul.f32 1.442695, %v2143_v39 }
0x1603   :  { %v2144_v43 = vmul.f32 1.442695, %v2142_v41  ;;  %v3591_v45 = vpop.permute.xlu1 %3590 }
0x1604   :  { %3698 = vpow2.f32 %v2146_v42  ;;  %v3593_v46 = vunpack.i.h.bf16 %v3591_v45  ;;  %v3592_v47 = vunpack.i.l.bf16 %v3591_v45 }
0x1605   :  { %3700 = vpow2.f32 %v2144_v43 }
0x1606   :  { %v3429_v48 = vpack.c.bf16 %v3593_v46, %v3592_v47 }
0x1607   :  { %v2246_v4 = vpop.permute.xlu1 %2245 }
0x1608   :  { %3430 = vmatprep.subr.bf16.mxu0 %v3429_v48 }
0x1609   :  { %3432 = vmatpush3.bf16.msra.mxu0 %v3429_v48 }
0x160b   :  { %v2248_v12 = vpop.permute.xlu1 %2247 }
0x160e   :  { %v3699_v1 = vpop.eup %3698 }
0x160f   :  { %v2151_v62 = vsel %vm34_vm0, %v3699_v1, 0.0  ;;  %v3701_v50 = vpop.eup %3700 }
0x1610   :  { %2152 = vadd.xlane.f32.xlu0 %v2151_v62  ;;  %v2148_v61 = vsel %vm34_vm0, %v3701_v50, 0.0 }
0x1614   :  { %2149 = vadd.xlane.f32.xlu0 %v2148_v61 }
0x162a   :  { %3595 = vrot.lane.b32.xlu0 %v4115_v33, %s3788_s16 }
0x169d   :  { %v2153_v60 = vpop.xlane.xlu0 %2152 }
0x169e   :  { %3702 = vrcp.f32 %v2153_v60 }
0x16a1   :  { %v2150_v59 = vpop.xlane.xlu0 %2149 }
0x16a2   :  { %3704 = vrcp.f32 %v2150_v59 }
0x16a5   :  { %v3596_v7 = vpop.permute.xlu0 %3595 }
0x16a6   :  { %v3598_v34 = vunpack.i.h.bf16 %v3596_v7  ;;  %v3597_v55 = vunpack.i.l.bf16 %v3596_v7 }
0x16a8   :  { %v3433_v63 = vpack.c.bf16 %v3598_v34, %v3597_v55  ;;  %v3703_v3 = vpop.eup %3702 }
0x16a9   :  { %v2157_v10 = vmul.f32 %v3703_v3, %v3699_v1 }
0x16aa   :  { %3435 = vmatprep.subr.msk.bf16.mxu0 %vm3920_vm3, %v3433_v63 }
0x16ac   :  { %v3705_v5 = vpop.eup %3704 }
0x16ad   :  { %v2156_v9 = vmul.f32 %v3705_v5, %v3701_v50 }
0x16af   :  { %3253 = vmatprep.mubr.msk.f32.mxu0 %vm34_vm0, %v2156_v9 }
0x16b0   :  { %3254 = vmatmul.mubr.msk.f32.vlgmr.msra.gmra.mrb[20].mxu0 %vm34_vm0, %v2157_v10 }
0x16b1   :  { %3438 = vmatpush3.bf16.xpose.msk.msra.mxu0 %vm3920_vm3, %v3433_v63  ;;  %3260 = vmatprep.mubr.msk.f32.mxu0 %vm323_vm2, %v2246_v4 }
0x16b8   :  { %3261 = vmatmul.mubr.msk.f32.vlgmr.msra.gmra.mrb[22].mxu0 %vm323_vm2, %v2248_v12 }
0x1783   :  { %v3255_v13 = vpop.f32.mrb[20].mxu0 }
0x1784   :  { %v2236_v14 = vpop.f32.mrb[21].mxu0 }
0x178b   :  { %v3262_v15 = vpop.f32.mrb[22].mxu0 }
0x178c   :  { %v2333_v16 = vadd.f32 %v3262_v15, %v3949_v8  ;;  %v2327_v30 = vpop.f32.mrb[23].mxu0 }
0x178d   :  { %v2328_v31 = vadd.f32 %v2327_v30, %v3951_v44 }
0x178e   :  { %v2339_v54 = vsel %vm34_vm0, %v2333_v16, -inf }
0x178f   :  { %2340 = vmax.xlane.f32.xlu1 %v2339_v54  ;;  %v2336_v58 = vsel %vm34_vm0, %v2328_v31, -inf }
0x1790   :  { %2337 = vmax.xlane.f32.xlu0 %v2336_v58 }
0x17a0   :  { %3600 = vrot.lane.b32.xlu1 %v4115_v33, %s3789_s17 }
0x17a4   :  { %3610 = vrot.lane.b32.xlu1 %v3609_v2, %s3783_s11 }
0x17a8   :  { %2447 = vrot.lane.b32.xlu1 %v4175_v24, %s3776_s23 }
0x17ac   :  { %2455 = vrot.lane.b32.xlu1 %v2236_v14, %s3790_s18 }
0x181c   :  { %v2341_v8 = vpop.xlane.xlu1 %2340 }
0x181d   :  { %v2343_v44 = vsub.f32 %v2333_v16, %v2341_v8  ;;  %v2338_v18 = vpop.xlane.xlu0 %2337 }
0x181e   :  { %v2342_v56 = vsub.f32 %v2328_v31, %v2338_v18  ;;  %v1554_v18 = vld [vmem:[#allocation2 + $0x90] sm:$0xff] }
0x181f   :  { %v2346_v19 = vmul.f32 1.442695, %v2343_v44 }
0x1820   :  { %v2344_v20 = vmul.f32 1.442695, %v2342_v56  ;;  %v3601_v25 = vpop.permute.xlu1 %3600 }
0x1821   :  { %v3603_v26 = vunpack.i.h.bf16 %v3601_v25  ;;  %v3602_v32 = vunpack.i.l.bf16 %v3601_v25  ;;  %v1556_v25 = vld [vmem:[#allocation2 + $0xa0] sm:$0xff] }
0x1822   :  { %3706 = vpow2.f32 %v2344_v20  ;;  %v1555_v20 = vld [vmem:[#allocation2 + $0x98] sm:$0xff] }
0x1823   :  { %v3439_v33 = vpack.c.bf16 %v3603_v26, %v3602_v32  ;;  %3708 = vpow2.f32 %v2346_v19  ;;  %v3455_v26 = vpack.c.bf16 %v1556_v25, %v1555_v20  ;;  %v3619_v32 = vpack.i.bf16 %v1556_v25, %v1555_v20 }
0x1824   :  { %v3611_v42 = vpop.permute.xlu1 %3610 }
0x1825   :  { %3440 = vmatprep.subr.bf16.mxu1 %v3439_v33  ;;  %v3613_v45 = vunpack.i.h.bf16 %v3611_v42  ;;  %v3612_v46 = vunpack.i.l.bf16 %v3611_v42 }
0x1826   :  { %3442 = vmatpush3.bf16.msra.mxu1 %v3439_v33  ;;  %v1557_v33 = vld [vmem:[#allocation2 + $0xa8] sm:$0xff] }
0x1827   :  { %v3447_v28 = vpack.c.bf16 %v3613_v45, %v3612_v46 }
0x1828   :  { %v2448_v62 = vpop.permute.xlu1 %2447 }
0x1829   :  { %v2469_v60 = vsel %vm323_vm2, %v4171_v22, %v2448_v62  ;;  %v2478_v22 = vrot.slane %v4103_v52, %v3940_v29 }
0x182c   :  { %v3707_v51 = vpop.eup %3706  ;;  %v2456_v61 = vpop.permute.xlu1 %2455 }
0x182d   :  { %v2348_v35 = vsel %vm34_vm0, %v3707_v51, 0.0  ;;  %v3709_v24 = vpop.eup %3708  ;;  %v2471_v7 = vsel %vm34_vm0, %v2469_v60, %v2456_v61 }
0x182e   :  { %2349 = vadd.xlane.f32.xlu0 %v2348_v35  ;;  %v2351_v36 = vsel %vm34_vm0, %v3709_v24, 0.0  ;;  %v1559_v35 = vld [vmem:[#allocation2 + $0xb8] sm:$0xff] }
0x1832   :  { %2352 = vadd.xlane.f32.xlu0 %v2351_v36  ;;  %v1560_v36 = vld [vmem:[#allocation2 + $0xc0] sm:$0xff] }
0x1848   :  { %3605 = vrot.lane.b32.xlu0 %v3604_v53, %s3783_s11 }
0x184c   :  { %2449 = vrot.lane.b32.xlu0 %v4173_v23, %s3776_s23 }
0x1850   :  { %2457 = vrot.lane.b32.xlu0 %v3255_v13, %s3790_s18 }
0x18bb   :  { %v2350_v37 = vpop.xlane.xlu0 %2349 }
0x18bc   :  { %3710 = vrcp.f32 %v2350_v37  ;;  %v3629_v37 = vpack.i.bf16 %v1560_v36, %v1559_v35 }
0x18bf   :  { %v2353_v38 = vpop.xlane.xlu0 %2352 }
0x18c0   :  { %3712 = vrcp.f32 %v2353_v38  ;;  %v2618_v38 = vrot.slane %v4103_v52, %v1289_v11 }
0x18c3   :  { %v3606_v49 = vpop.permute.xlu0 %3605 }
0x18c4   :  { %v3608_v39 = vunpack.i.h.bf16 %v3606_v49  ;;  %v3607_v40 = vunpack.i.l.bf16 %v3606_v49 }
0x18c6   :  { %v3711_v41 = vpop.eup %3710  ;;  %v3443_v43 = vpack.c.bf16 %v3608_v39, %v3607_v40 }
0x18c7   :  { %v2356_v47 = vmul.f32 %v3711_v41, %v3707_v51  ;;  %v2450_v1 = vpop.permute.xlu0 %2449  ;;  %v1558_v51 = vld [vmem:[#allocation2 + $0xb0] sm:$0xff] }
0x18c8   :  { %3444 = vmatprep.subr.bf16.mxu1 %v3443_v43  ;;  %v2470_v34 = vsel %vm323_vm2, %v4169_v21, %v2450_v1 }
0x18c9   :  { %3267 = vmatprep.mubr.msk.f32.mxu1 %vm34_vm0, %v2356_v47 }
0x18ca   :  { %v3713_v27 = vpop.eup %3712 }
0x18cb   :  { %v2357_v53 = vmul.f32 %v3713_v27, %v3709_v24  ;;  %v2458_v50 = vpop.permute.xlu0 %2457  ;;  %v3624_v24 = vpack.i.bf16 %v1558_v51, %v1557_v33 }
0x18cc   :  { %v2472_v63 = vsel %vm34_vm0, %v2470_v34, %v2458_v50 }
0x18cd   :  { %3268 = vmatmul.mubr.msk.f32.vlgmr.msra.gmra.mrb[18].mxu1 %vm34_vm0, %v2357_v53 }
0x18ce   :  { %3446 = vmatpush3.bf16.msra.mxu1 %v3443_v43 }
0x18cf   :  { %3448 = vmatprep.subr.bf16.mxu1 %v3447_v28 }
0x18d2   :  { %3450 = vmatpush3.bf16.msra.mxu1 %v3447_v28 }
0x19a0   :  { %v3269_v23 = vpop.f32.mrb[18].mxu1 }
0x19a1   :  { %2465 = vrot.lane.b32.xlu0 %v3269_v23, %s3791_s19  ;;  %v2436_v48 = vpop.f32.mrb[19].mxu1 }
0x19a2   :  { %2463 = vrot.lane.b32.xlu1 %v2436_v48, %s3791_s19 }
0x1a13   :  { %v2466_v59 = vpop.permute.xlu0 %2465 }
0x1a14   :  { %v2464_v55 = vpop.permute.xlu1 %2463  ;;  %v2474_v5 = vsel %vm1144_vm10, %v2472_v63, %v2466_v59 }
0x1a15   :  { %v2473_v3 = vsel %vm1144_vm10, %v2471_v7, %v2464_v55 }
0x1a16   :  { %3278 = vmatprep.mubr.msk.f32.mxu1 %vm172_vm1, %v2473_v3 }
0x1a17   :  { %3279 = vmatmul.mubr.msk.f32.vlgmr.msra.gmra.mrb[20].mxu1 %vm172_vm1, %v2474_v5 }
0x1aea   :  { %v3280_v9 = vpop.f32.mrb[20].mxu1 }
0x1aeb   :  { %v2573_v10 = vadd.f32 %v3280_v9, %v2478_v22  ;;  %v2567_v4 = vpop.f32.mrb[21].mxu1 }
0x1aec   :  { %v2568_v12 = vadd.f32 %v2567_v4, %v2478_v22 }
0x1aed   :  { %v2577_v21 = vadd.f32 %v2573_v10, %v4099_v57 }
0x1aee   :  { %v2576_v13 = vadd.f32 %v2568_v12, %v4095_v0  ;;  %v1553_v0 = vld [vmem:[#allocation2 + $0x88] sm:$0xff] }
0x1aef   :  { %v2581_v14 = vsel %vm172_vm1, %v2577_v21, 0.0  ;;  %v3614_v56 = vpack.i.bf16 %v1554_v18, %v1553_v0  ;;  %v3451_v19 = vpack.c.bf16 %v1554_v18, %v1553_v0 }
0x1af0   :  { %2582 = vadd.xlane.f32.xlu0 %v2581_v14  ;;  %v2578_v15 = vsel %vm172_vm1, %v2576_v13, 0.0 }
0x1af1   :  { %2579 = vadd.xlane.f32.xlu1 %v2578_v15  ;;  %3452 = vmatprep.subr.bf16.mxu0 %v3451_v19 }
0x1af2   :  { %3454 = vmatpush3.bf16.msra.mxu0 %v3451_v19 }
0x1af3   :  { %3456 = vmatprep.subr.bf16.mxu0 %v3455_v26 }
0x1af6   :  { %3458 = vmatpush3.bf16.msra.mxu0 %v3455_v26 }
0x1b7d   :  { %v2583_v16 = vpop.xlane.xlu0 %2582 }
0x1b7e   :  { %v2585_v30 = vmul.f32 0.03125, %v2583_v16  ;;  %v2580_v31 = vpop.xlane.xlu1 %2579 }
0x1b7f   :  { %v2584_v54 = vmul.f32 0.03125, %v2580_v31 }
0x1b80   :  { %v2587_v58 = vsub.f32 %v2577_v21, %v2585_v30 }
0x1b81   :  { %v2586_v29 = vsub.f32 %v2576_v13, %v2584_v54 }
0x1b82   :  { %v2589_v2 = vmul.f32 %v2587_v58, %v2587_v58 }
0x1b83   :  { %v2588_v8 = vmul.f32 %v2586_v29, %v2586_v29 }
0x1b84   :  { %v2593_v44 = vsel %vm172_vm1, %v2589_v2, 0.0 }
0x1b85   :  { %2594 = vadd.xlane.f32.xlu1 %v2593_v44  ;;  %v2590_v57 = vsel %vm172_vm1, %v2588_v8, 0.0 }
0x1b86   :  { %2591 = vadd.xlane.f32.xlu0 %v2590_v57 }
0x1b96   :  { %2610 = vrot.lane.b32.xlu1 %v2478_v22, %s3779_s1 }
0x1b9a   :  { %3615 = vrot.lane.b32.xlu1 %v3614_v56, %s3779_s1 }
0x1b9c   :  { %2605 = vrot.lane.b32.xlu0 %v2478_v22, %s3778_s0 }
0x1b9e   :  { %3625 = vrot.lane.b32.xlu1 %v3624_v24, %s3779_s1 }
0x1ba0   :  { %3620 = vrot.lane.b32.xlu0 %v3619_v32, %s3779_s1 }
0x1ba2   :  { %2751 = vrot.lane.b32.xlu1 %v2618_v38, %s3779_s1 }
0x1ba4   :  { %3630 = vrot.lane.b32.xlu0 %v3629_v37, %s3779_s1 }
0x1c12   :  { %v2595_v49 = vpop.xlane.xlu1 %2594 }
0x1c13   :  { %v2597_v39 = vmul.f32 0.03125, %v2595_v49  ;;  %v2592_v40 = vpop.xlane.xlu0 %2591 }
0x1c14   :  { %v2596_v41 = vmul.f32 0.03125, %v2592_v40  ;;  %v2866_v40 = vrot.slane %v4103_v52, %v1538_v17 }
0x1c15   :  { %v2599_v42 = vadd.f32 1e-12, %v2597_v39 }
0x1c16   :  { %v2598_v43 = vadd.f32 1e-12, %v2596_v41  ;;  %v2611_v23 = vpop.permute.xlu1 %2610 }
0x1c17   :  { %3714 = vrsqrt.f32 %v2599_v42  ;;  %v2606_v46 = vpop.permute.xlu0 %2605 }
0x1c18   :  { %3716 = vrsqrt.f32 %v2598_v43 }
0x1c1a   :  { %v3616_v62 = vpop.permute.xlu1 %3615 }
0x1c1b   :  { %v3618_v50 = vunpack.i.h.bf16 %v3616_v62  ;;  %v3617_v61 = vunpack.i.l.bf16 %v3616_v62  ;;  %v3621_v59 = vpop.permute.xlu0 %3620 }
0x1c1c   :  { %v3623_v7 = vunpack.i.h.bf16 %v3621_v59  ;;  %v3622_v34 = vunpack.i.l.bf16 %v3621_v59 }
0x1c1d   :  { %v3459_v60 = vpack.c.bf16 %v3618_v50, %v3617_v61 }
0x1c1e   :  { %v3626_v55 = vpop.permute.xlu1 %3625  ;;  %v3463_v5 = vpack.c.bf16 %v3623_v7, %v3622_v34 }
0x1c1f   :  { %3460 = vmatprep.subr.bf16.mxu1 %v3459_v60  ;;  %v3628_v63 = vunpack.i.h.bf16 %v3626_v55  ;;  %v3627_v3 = vunpack.i.l.bf16 %v3626_v55  ;;  %v3631_v9 = vpop.permute.xlu0 %3630 }
0x1c20   :  { %3462 = vmatpush3.bf16.msra.mxu1 %v3459_v60  ;;  %v3633_v10 = vunpack.i.h.bf16 %v3631_v9  ;;  %v3632_v4 = vunpack.i.l.bf16 %v3631_v9 }
0x1c21   :  { %v3715_v45 = vpop.eup %3714  ;;  %v3467_v22 = vpack.c.bf16 %v3628_v63, %v3627_v3  ;;  %3464 = vmatprep.subr.bf16.mxu1 %v3463_v5 }
0x1c22   :  { %v3717_v47 = vpop.eup %3716  ;;  %v2603_v27 = vmul.f32 %v3715_v45, %v2587_v58  ;;  %v3471_v12 = vpack.c.bf16 %v3633_v10, %v3632_v4  ;;  %v2752_v33 = vpop.permute.xlu1 %2751 }
0x1c23   :  { %v2602_v28 = vmul.f32 %v3717_v47, %v2586_v29 }
0x1c24   :  { %v2609_v53 = vmul.f32 %v2606_v46, %v2603_v27  ;;  %3466 = vmatpush3.bf16.msra.mxu1 %v3463_v5 }
0x1c25   :  { %v2608_v48 = vmul.f32 %v2606_v46, %v2602_v28  ;;  %3468 = vmatprep.subr.bf16.mxu1 %v3467_v22 }
0x1c26   :  { %v2614_v11 = vadd.f32 %v2611_v23, %v2609_v53 }
0x1c27   :  { %v2613_v1 = vadd.f32 %v2611_v23, %v2608_v48 }
0x1c28   :  { %3470 = vmatpush3.bf16.msra.mxu1 %v3467_v22 }
0x1c29   :  { %3289 = vmatprep.mubr.msk.f32.mxu0 %vm172_vm1, %v2613_v1  ;;  %3472 = vmatprep.subr.bf16.mxu1 %v3471_v12 }
0x1c2a   :  { %3290 = vmatmul.mubr.msk.f32.vlgmr.msra.gmra.mrb[24].mxu0 %vm172_vm1, %v2614_v11 }
0x1c2c   :  { %3474 = vmatpush3.bf16.msra.mxu1 %v3471_v12 }
0x1cfd   :  { %v3291_v21 = vpop.f32.mrb[24].mxu0 }
0x1cfe   :  { %v2697_v13 = vadd.f32 %v3291_v21, %v2618_v38  ;;  %v2691_v14 = vpop.f32.mrb[25].mxu0 }
0x1cff   :  { %v2692_v15 = vadd.f32 %v2691_v14, %v2618_v38 }
0x1d00   :  { %v2703_v16 = vmul.f32 0.044715, %v2697_v13  ;;  %v2701_v25 = vmul.f32 0.5, %v2697_v13 }
0x1d01   :  { %v2702_v30 = vmul.f32 0.044715, %v2692_v15  ;;  %v2700_v19 = vmul.f32 0.5, %v2692_v15 }
0x1d02   :  { %v2705_v31 = vmul.f32 %v2703_v16, %v2697_v13 }
0x1d03   :  { %v2704_v54 = vmul.f32 %v2702_v30, %v2692_v15 }
0x1d04   :  { %v2707_v58 = vmul.f32 %v2705_v31, %v2697_v13 }
0x1d05   :  { %v2706_v29 = vmul.f32 %v2704_v54, %v2692_v15 }
0x1d06   :  { %v2709_v2 = vadd.f32 %v2707_v58, %v2697_v13 }
0x1d07   :  { %v2708_v8 = vadd.f32 %v2706_v29, %v2692_v15 }
0x1d08   :  { %v2711_v44 = vmul.f32 0.7978846, %v2709_v2 }
0x1d09   :  { %v2710_v57 = vmul.f32 0.7978846, %v2708_v8 }
0x1d0a   :  { %3718 = vtanh.f32 %v2711_v44 }
0x1d0b   :  { %3720 = vtanh.f32 %v2710_v57 }
0x1d14   :  { %v3719_v0 = vpop.eup %3718 }
0x1d15   :  { %v3721_v18 = vpop.eup %3720  ;;  %v2715_v56 = vadd.f32 1.0, %v3719_v0 }
0x1d16   :  { %v2714_v20 = vadd.f32 1.0, %v3721_v18 }
0x1d17   :  { %v2717_v32 = vmul.f32 %v2715_v56, %v2701_v25 }
0x1d18   :  { %v2716_v26 = vmul.f32 %v2714_v20, %v2700_v19 }
0x1d1a   :  { %3308 = vmatprep.mubr.msk.f32.mxu1 %vm1426_vm11, %v2716_v26 }
0x1d1b   :  { %3309 = vmatmul.mubr.msk.f32.vlgmr.msra.gmra.mrb[22].mxu1 %vm1426_vm11, %v2717_v32 }
0x1dee   :  { %v3310_v51 = vpop.f32.mrb[22].mxu1 }
0x1def   :  { %v2832_v35 = vadd.f32 %v3310_v51, %v2752_v33  ;;  %v2826_v24 = vpop.f32.mrb[23].mxu1 }
0x1df0   :  { %v2827_v36 = vadd.f32 %v2826_v24, %v2752_v33 }
0x1df1   :  { %v2836_v37 = vadd.f32 %v2832_v35, %v2614_v11 }
0x1df2   :  { %v2835_v38 = vadd.f32 %v2827_v36, %v2613_v1 }
0x1df3   :  { %v2840_v49 = vsel %vm172_vm1, %v2836_v37, 0.0 }
0x1df4   :  { %2841 = vadd.xlane.f32.xlu1 %v2840_v49  ;;  %v2837_v39 = vsel %vm172_vm1, %v2835_v38, 0.0 }
0x1df5   :  { %2838 = vadd.xlane.f32.xlu0 %v2837_v39 }
0x1e05   :  { %2870 = vrot.lane.b32.xlu1 %v2866_v40, %s3778_s0 }
0x1e81   :  { %v2842_v41 = vpop.xlane.xlu1 %2841 }
0x1e82   :  { %v2844_v42 = vmul.f32 0.03125, %v2842_v41  ;;  %v2839_v43 = vpop.xlane.xlu0 %2838 }
0x1e83   :  { %v2843_v45 = vmul.f32 0.03125, %v2839_v43 }
0x1e84   :  { %v2846_v46 = vsub.f32 %v2836_v37, %v2844_v42 }
0x1e85   :  { %v2845_v47 = vsub.f32 %v2835_v38, %v2843_v45  ;;  %v2871_v61 = vpop.permute.xlu1 %2870 }
0x1e86   :  { %v2848_v53 = vmul.f32 %v2846_v46, %v2846_v46 }
0x1e87   :  { %v2847_v27 = vmul.f32 %v2845_v47, %v2845_v47 }
0x1e88   :  { %v2852_v23 = vsel %vm172_vm1, %v2848_v53, 0.0 }
0x1e89   :  { %v2849_v28 = vsel %vm172_vm1, %v2847_v27, 0.0 }
0x1e8a   :  { %2850 = vadd.xlane.f32.xlu0 %v2849_v28 }
0x1e8e   :  { %2853 = vadd.xlane.f32.xlu0 %v2852_v23 }
0x1f17   :  { %v2851_v48 = vpop.xlane.xlu0 %2850 }
0x1f18   :  { %v2855_v6 = vmul.f32 0.03125, %v2851_v48 }
0x1f1a   :  { %v2857_v1 = vadd.f32 1e-12, %v2855_v6 }
0x1f1b   :  { %v2854_v17 = vpop.xlane.xlu0 %2853 }
0x1f1c   :  { %3722 = vrsqrt.f32 %v2857_v1  ;;  %v2856_v52 = vmul.f32 0.03125, %v2854_v17 }
0x1f1e   :  { %v2858_v11 = vadd.f32 1e-12, %v2856_v52 }
0x1f20   :  { %3724 = vrsqrt.f32 %v2858_v11 }
0x1f26   :  { %v3723_v62 = vpop.eup %3722 }
0x1f27   :  { %v2861_v50 = vmul.f32 %v3723_v62, %v2845_v47 }
0x1f29   :  { %v2867_v60 = vmul.f32 %v2866_v40, %v2861_v50 }
0x1f2a   :  { %v3725_v59 = vpop.eup %3724 }
0x1f2b   :  { %v2862_v7 = vmul.f32 %v3725_v59, %v2846_v46  ;;  %v2873_v34 = vadd.f32 %v2871_v61, %v2867_v60 }
0x1f2d   :  { %v2868_v55 = vmul.f32 %v2866_v40, %v2862_v7  ;;  %v2875_v63 = vsel %vm172_vm1, %v2873_v34, 0.0 }
0x1f2e   :  { %2877 = vst [vmem:[#allocation5] sm:$0xff] %v2875_v63 }
0x1f2f   :  { %v2874_v3 = vadd.f32 %v2871_v61, %v2868_v55 }
0x1f31   :  { %v2876_v5 = vsel %vm172_vm1, %v2874_v3, 0.0 }
0x1f32   :  { %2878 = vst [vmem:[#allocation5 + $0x8] sm:$0xff] %v2876_v5 }
0x1f33   :  { %3759 = shalt.err (!%p3756_p12)
}
0x1f34   :  { %s3760_s27 = scalar_lea.hbm %s4284_s3, 256 }
0x1f35   :  { %p3761_p13 = scmp.ne.s32.totalorder %s4284_s3, %s3760_s27  ;;  %p3764_p0 = scmp.lt.u32.totalorder %s3760_s27, %s4284_s3 }
0x1f37   :  { %p3766_p1 = pnand %p3764_p0, %p3761_p13 }
0x1f39   :  { %3769 = shalt.err (!%p3766_p1)
}
0x1f3a   :  { %2890 = dma.vmem_to_hbm [thread:$0]  %s2885_s21, 256, %s4284_s3, [#allocation4], %s3775_s22, %s3775_s22, %s3776_s23  }
0x1f3b   :  { %3772 = dma.done.wait [#allocation4], 256  }
0x1f3c   :  { %3773 = vsyncadd [#allocation4], 4294967040 }
0x1f3d   :  { %2894 = vsyncpa [#allocation3], 1 }
0x1f3e   :  { %2895 = vsyncpa [#allocation4], 1 }

</bundles_post_ra>
